<compile_context>
chip_gen: v6e
topology: v6e:2x2x1
jax: 0.10.0
libtpu: 0.0.40
codegen_flags: <defaults>
</compile_context>

<pallas_src>
import functools

import numpy as np
import jax
import jax.numpy as jnp
from jax.experimental import pallas as pl
from jax.experimental.pallas import tpu as pltpu

# ----- model dimensions (small, consistent with ACModel(image_dim, memory_dim, instr_dim)) -----
IMG_H, IMG_W, IMG_C = 7, 7, 3               # BabyAI observation image
IMG_FLAT = IMG_H * IMG_W * IMG_C            # 147 (flattened frame, row-major (h, w, c))
C1 = 16                                     # first conv channels
GROUP = 256                                 # lane stride of one pooling-window group (128-aligned)
CONV1_COLS = 4 * GROUP                      # 1024 columns of the "big" conv1 matmul
POOL_COLS = 3 * 3 * C1                      # 144: pooled 3x3x16 flat == conv2 im2col row
IMAGE_DIM = 32
INSTR_DIM = 32
MEMORY_DIM = 32                             # semi_memory_size; memory_size = 2 * MEMORY_DIM
N_ACTIONS = 7
LOGITS_PAD = 128                            # actor logits padded to a lane-dense width
VOCAB = 16
INSTR_LEN = 8
ACTOR_HIDDEN = 64

# packed per-step input lanes: [image_emb | instr_emb | action one-hot | mask]
PACK_X0 = 0
PACK_I0 = IMAGE_DIM
PACK_A0 = IMAGE_DIM + INSTR_DIM
PACK_M0 = IMAGE_DIM + INSTR_DIM + N_ACTIONS
PACK_DIM = PACK_M0 + 1                      # 72


def _vmem_spec():
    # whole-array block resident in VMEM (for small, grid-less kernels)
    return pl.BlockSpec(memory_space=pltpu.MemorySpace.VMEM)


# --------------------------------------------------------------------------------------
# Kernel 1: fused image encoder (conv1 -> ReLU -> 2x2 maxpool -> conv2 -> ReLU) per frame tile.
# conv1 is a (tm,147) @ (147,1024) matmul; the column layout groups the four pooling-window
# offsets (di,dj) at 128-aligned lane offsets g*GROUP, each holding the pooled-output-ordered
# (oi,oj,c) block, so maxpool is an elementwise max of four lane slices and the pooled block
# is directly the conv2 im2col row. All intermediates stay in VMEM (no HBM round trips).
# --------------------------------------------------------------------------------------
def fused_image_encoder_kernel(x_ref, w1_ref, b1_ref, w2_ref, b2_ref, o_ref):
    y = jnp.maximum(jnp.dot(x_ref[...], w1_ref[...], preferred_element_type=jnp.float32)
                    + b1_ref[...], 0.0)                              # (tm, 4*GROUP)
    p0 = y[:, 0 * GROUP:0 * GROUP + POOL_COLS]
    p1 = y[:, 1 * GROUP:1 * GROUP + POOL_COLS]
    p2 = y[:, 2 * GROUP:2 * GROUP + POOL_COLS]
    p3 = y[:, 3 * GROUP:3 * GROUP + POOL_COLS]
    pooled = jnp.maximum(jnp.maximum(p0, p1), jnp.maximum(p2, p3))   # (tm, 144) == cols2
    z = jnp.dot(pooled, w2_ref[...], preferred_element_type=jnp.float32) + b2_ref[...]
    o_ref[...] = jnp.maximum(z, 0.0)                                 # (tm, IMAGE_DIM)


def image_encoder(params, images, tm=512):
    """images (N, 7, 7, 3) -> features (N, IMAGE_DIM); one pallas_call, grid over frame tiles."""
    N = images.shape[0]
    x = images.reshape(N, IMG_FLAT)
    tm = min(tm, ((N + 7) // 8) * 8)                 # row tile, multiple of 8 sublanes
    Npad = ((N + tm - 1) // tm) * tm
    if Npad != N:
        x = jnp.pad(x, ((0, Npad - N), (0, 0)))
    out = pl.pallas_call(
        fused_image_encoder_kernel,
        out_shape=jax.ShapeDtypeStruct((Npad, IMAGE_DIM), jnp.float32),
        grid=(Npad // tm,),
        in_specs=[pl.BlockSpec((tm, IMG_FLAT), lambda i: (i, 0)),
                  pl.BlockSpec((IMG_FLAT, CONV1_COLS), lambda i: (0, 0)),   # weights resident
                  pl.BlockSpec((1, CONV1_COLS), lambda i: (0, 0)),
                  pl.BlockSpec((POOL_COLS, IMAGE_DIM), lambda i: (0, 0)),
                  pl.BlockSpec((1, IMAGE_DIM), lambda i: (0, 0))],
        out_specs=pl.BlockSpec((tm, IMAGE_DIM), lambda i: (i, 0)),
        compiler_params=pltpu.CompilerParams(dimension_semantics=("parallel",)),
    )(x, params["conv1_wbig"], params["conv1_bbig"], params["conv2_w"], params["conv2_b"])
    return out[:N]


def _build_conv1_big(w1, b1):
    """w1 (2,2,3,16), b1 (16,) -> dense (147, 4*GROUP) matmul weight + (1, 4*GROUP) bias.

    Output column layout: col = (di*2+dj)*GROUP + (oi*3+oj)*C1 + c, i.e. the value of conv1 at
    spatial position (2*oi+di, 2*oj+dj), channel c.  Taking the elementwise max over the four
    (di,dj) groups is exactly the 2x2 maxpool, and the per-group (oi,oj,c) flattening is exactly
    the (kh,kw,cin) im2col row of the following 3x3 conv.
    """
    w1 = np.asarray(w1, np.float32)
    b1 = np.asarray(b1, np.float32)
    Wbig = np.zeros((IMG_FLAT, CONV1_COLS), np.float32)
    bbig = np.zeros((CONV1_COLS,), np.float32)
    for di in range(2):
        for dj in range(2):
            g = di * 2 + dj
            for oi in range(3):
                for oj in range(3):
                    r0, c0 = 2 * oi + di, 2 * oj + dj          # conv1 output position
                    col = g * GROUP + (oi * 3 + oj) * C1
                    bbig[col:col + C1] = b1
                    for ki in range(2):
                        for kj in range(2):
                            row = ((r0 + ki) * IMG_W + (c0 + kj)) * IMG_C
                            Wbig[row:row + IMG_C, col:col + C1] = w1[ki, kj]
    return jnp.asarray(Wbig), jnp.asarray(bbig).reshape(1, CONV1_COLS)


# --------------------------------------------------------------------------------------
# Kernel 2: GRU hidden recurrence (gate order r, z, n like torch.nn.GRU).
# Input projection gx = x @ Wx + bx is hoisted out of the time loop (one big matmul in glue).
# gx_ref: (L, E, 3D)  -> h_ref: (E, D)
# --------------------------------------------------------------------------------------
def gru_recurrence_kernel(gx_ref, wh_ref, bh_ref, h_ref):
    L, E, _ = gx_ref.shape
    D = wh_ref.shape[0]
    wh = wh_ref[...]
    bh = bh_ref[...]
    h = jnp.zeros((E, D), jnp.float32)
    for t in range(L):  # static unroll (L is small)
        gx = gx_ref[t]                                           # (E, 3D)
        gh = jnp.dot(h, wh, preferred_element_type=jnp.float32) + bh
        r = jax.nn.sigmoid(gx[:, 0 * D:1 * D] + gh[:, 0 * D:1 * D])
        z = jax.nn.sigmoid(gx[:, 1 * D:2 * D] + gh[:, 1 * D:2 * D])
        n = jnp.tanh(gx[:, 2 * D:3 * D] + r * gh[:, 2 * D:3 * D])
        h = (1.0 - z) * n + z * h
    h_ref[...] = h


def instr_encoder(params, tokens):
    # TODO(synk): no per-sequence length masking; padded variable-length instructions would
    # differ from a packed-sequence torch GRU.
    E = tokens.shape[0]
    emb = params["word_emb"][tokens]                              # (E, L, D) embedding gather (glue)
    gx = jnp.einsum("eld,dk->elk", emb, params["gru_wx"]) + params["gru_bx"]   # hoisted input proj
    gx = jnp.transpose(gx, (1, 0, 2))                             # (L, E, 3D)
    return pl.pallas_call(
        gru_recurrence_kernel,
        out_shape=jax.ShapeDtypeStruct((E, INSTR_DIM), jnp.float32),
        in_specs=[_vmem_spec()] * 3,
        out_specs=_vmem_spec(),
    )(gx, params["gru_wh"], params["gru_bh"])


# --------------------------------------------------------------------------------------
# Kernel 3: fused ACModel recurrence — whole recurrence loop in ONE pallas_call,
# grid=(batch_tiles, recurrence), dimension_semantics=("parallel","arbitrary").
#   step t:  mem' = LSTMCell(x_img[t], mem * mask[t]);  logits = actor([h', instr[t]])
#   per-step stats are reduced over the batch tile IN-KERNEL and accumulated into a tiny
#   resident (8,128) block (lane 0: sum entropy, lane 1: sum -log p(a), lane 2: sum correct).
#   (h, c) live in VMEM scratch across recurrence steps; weights are resident (constant maps);
#   per-step data arrives as ONE packed (bt, 72) DMA; logits are padded to 128 lanes.
# --------------------------------------------------------------------------------------
def fused_recurrence_kernel(packed_ref,
                            wih_ref, whh_ref, bih_ref, bhh_ref,
                            wa1h_ref, wa1i_ref, ba1_ref, wa2_ref, ba2_ref,
                            stats_ref, h_scr, c_scr):
    t = pl.program_id(1)
    Dm = MEMORY_DIM

    @pl.when(t == 0)
    def _():
        # TODO(synk): the no-grad episode rollout that fills `memories` from `done` flags is a
        # data-dependent ragged loop; memory starts at zeros here.
        h_scr[...] = jnp.zeros_like(h_scr)
        c_scr[...] = jnp.zeros_like(c_scr)
        stats_ref[...] = jnp.zeros_like(stats_ref)

    pk = packed_ref[0]                                   # (bt, PACK_DIM), single per-step DMA
    x = pk[:, PACK_X0:PACK_X0 + IMAGE_DIM]               # image embedding
    instr = pk[:, PACK_I0:PACK_I0 + INSTR_DIM]           # instruction embedding
    act_oh = pk[:, PACK_A0:PACK_A0 + N_ACTIONS]          # taken action, one-hot
    msk = pk[:, PACK_M0:PACK_M0 + 1]                     # episode-start mask

    h_prev = h_scr[...] * msk
    c_prev = c_scr[...] * msk

    # LSTMCell; gate column order (i, f, o, g) -> one wide 96-lane sigmoid + one tanh
    gates = (jnp.dot(x, wih_ref[...], preferred_element_type=jnp.float32) + bih_ref[...]
             + jnp.dot(h_prev, whh_ref[...], preferred_element_type=jnp.float32) + bhh_ref[...])
    sig = jax.nn.sigmoid(gates[:, 0:3 * Dm])
    i_g = sig[:, 0 * Dm:1 * Dm]
    f_g = sig[:, 1 * Dm:2 * Dm]
    o_g = sig[:, 2 * Dm:3 * Dm]
    g_g = jnp.tanh(gates[:, 3 * Dm:4 * Dm])
    c_new = f_g * c_prev + i_g * g_g
    h_new = o_g * jnp.tanh(c_new)
    h_scr[...] = h_new
    c_scr[...] = c_new

    # actor head: split first-layer weight (no lane concat); second layer padded to 128 lanes
    # with bias -1e9 on padded lanes so softmax/entropy run lane-dense and padded p == 0.
    a1 = jnp.tanh(jnp.dot(h_new, wa1h_ref[...], preferred_element_type=jnp.float32)
                  + jnp.dot(instr, wa1i_ref[...], preferred_element_type=jnp.float32)
                  + ba1_ref[...])
    logits = jnp.dot(a1, wa2_ref[...], preferred_element_type=jnp.float32) + ba2_ref[...]  # (bt,128)

    m = jnp.max(logits, axis=1, keepdims=True)
    z = logits - m
    e = jnp.exp(z)                                       # padded lanes underflow to exactly 0
    s = jnp.sum(e, axis=1, keepdims=True)
    logp = z - jnp.log(s)
    p = e / s

    ent_row = -jnp.sum(p * logp, axis=1, keepdims=True)                        # (bt, 1)
    nll_row = -jnp.sum(act_oh * logp[:, 0:N_ACTIONS], axis=1, keepdims=True)   # (bt, 1)
    # NOTE: ties count as correct; torch argmax picks the first max, so exact ties may differ.
    is_max = (logits[:, 0:N_ACTIONS] >= m).astype(jnp.float32)
    corr_row = (jnp.sum(act_oh * is_max, axis=1, keepdims=True) > 0.0).astype(jnp.float32)

    # reduce over the batch tile in-kernel; accumulate into the resident (8,128) stats block
    lane = jax.lax.broadcasted_iota(jnp.int32, (ent_row.shape[0], 128), 1)
    step_stats = (jnp.where(lane == 0, ent_row, 0.0)
                  + jnp.where(lane == 1, nll_row, 0.0)
                  + jnp.where(lane == 2, corr_row, 0.0))
    step_sum = jnp.sum(step_stats, axis=0, keepdims=True)                      # (1, 128)
    row = jax.lax.broadcasted_iota(jnp.int32, (8, 128), 0)
    stats_ref[...] += jnp.where(row == 0, step_sum, 0.0)


def _pick_bt(Bstep):
    """Batch tile: multiple of 8 dividing Bstep, capped, preferring >=2 tiles so the 'parallel'
    axis can shard across both v7x TensorCores (also bounds per-step VMEM for large Bstep)."""
    for bt in (512, 256, 128, 64, 32, 16, 8):
        if bt * 2 <= Bstep and Bstep % bt == 0:
            return bt
    return Bstep


def run_fused_recurrence(params, packed_steps, recurrence):
    R, Bstep, _ = packed_steps.shape
    bt = _pick_bt(Bstep)
    nb = Bstep // bt

    def resident(shape):
        nd = len(shape)
        return pl.BlockSpec(shape, lambda b, t: (0,) * nd)

    return pl.pallas_call(
        fused_recurrence_kernel,
        out_shape=jax.ShapeDtypeStruct((nb * 8, 128), jnp.float32),
        grid=(nb, recurrence),
        in_specs=[pl.BlockSpec((1, bt, PACK_DIM), lambda b, t: (t, b, 0)),
                  resident(params["lstm_wih"].shape), resident(params["lstm_whh"].shape),
                  resident(params["lstm_bih"].shape), resident(params["lstm_bhh"].shape),
                  resident(params["actor_w1h"].shape), resident(params["actor_w1i"].shape),
                  resident(params["actor_b1"].shape), resident(params["actor_w2"].shape),
                  resident(params["actor_b2"].shape)],
        out_specs=pl.BlockSpec((8, 128), lambda b, t: (b, 0)),
        scratch_shapes=[pltpu.VMEM((bt, MEMORY_DIM), jnp.float32),
                        pltpu.VMEM((bt, MEMORY_DIM), jnp.float32)],
        compiler_params=pltpu.CompilerParams(dimension_semantics=("parallel", "arbitrary")),
    )(packed_steps,
      params["lstm_wih"], params["lstm_whh"], params["lstm_bih"], params["lstm_bhh"],
      params["actor_w1h"], params["actor_w1i"], params["actor_b1"],
      params["actor_w2"], params["actor_b2"])


# --------------------------------------------------------------------------------------
# forward_batch: mirrors MetaLearner.forward_batch recurrence loop & loss accounting.
# Whole forward (image encoder + GRU + fused recurrence + loss math) runs under one jit;
# the float() log extraction stays OUTSIDE the jitted region.
# --------------------------------------------------------------------------------------
@functools.partial(jax.jit, static_argnames=("recurrence",))
def _forward_batch_impl(params, images, tokens, actions, mask, episode_ids,
                        entropy_coef, recurrence):
    num_frames = images.shape[0]
    Bstep = num_frames // recurrence            # starting_indexes(): drop the ragged tail
    total = Bstep * recurrence

    # per-frame precompute (done once, not per recurrence step)
    x_img_all = image_encoder(params, images[:total])                 # (total, IMAGE_DIM)
    instr_embedding = instr_encoder(params, tokens)                   # (n_episodes, INSTR_DIM)
    instr_all = instr_embedding[episode_ids[:total]]                  # (total, INSTR_DIM)
    act_oh_all = jax.nn.one_hot(actions[:total], N_ACTIONS, dtype=jnp.float32)
    mask_all = mask[:total].reshape(total, 1)

    # one packed per-frame tensor -> one per-step DMA inside the kernel; the single step-major
    # transpose below is the only extra copy pass (fused by XLA with the concat producer).
    packed = jnp.concatenate([x_img_all, instr_all, act_oh_all, mask_all], axis=1)  # (total, 72)
    packed_steps = jnp.transpose(packed.reshape(Bstep, recurrence, PACK_DIM), (1, 0, 2))

    stats = run_fused_recurrence(params, packed_steps, recurrence)     # (nb*8, 128)

    sums = jnp.sum(stats, axis=0)                                      # (128,)
    denom = jnp.float32(total)
    final_entropy = sums[0] / denom          # == (sum_t mean_batch entropy_t) / recurrence
    final_policy_loss = sums[1] / denom      # == (sum_t mean_batch nll_t) / recurrence
    accuracy = sums[2] / denom               # == correct / total_frames
    final_loss = final_policy_loss - entropy_coef * final_entropy
    return final_loss, final_entropy, final_policy_loss, accuracy


def forward_batch_jax(params, demo, recurrence, entropy_coef):
    loss, ent, ploss, acc = _forward_batch_impl(
        params, demo["images"], demo["instr_tokens"], demo["actions"],
        demo["mask"], demo["episode_ids"], jnp.float32(entropy_coef),
        recurrence=recurrence)
    log = {"entropy": float(ent), "policy_loss": float(ploss), "accuracy": float(acc)}
    return loss, log


class MetaLearnerPallas:
    """Forward-pass-only port of MetaLearner; compute hot path runs in Pallas kernels."""

    def __init__(self, params, task_num=2, recurrence=2, entropy_coef=0.01):
        self.params = params
        self.task_num = task_num
        self.recurrence = recurrence
        self.entropy_coef = entropy_coef

    def forward(self, demo):
        logs = []
        for _task in range(self.task_num):
            # TODO(synk): per-task grammar induction, fast_net deepcopy, inner-loop SGD gradients
            # and the Adam meta_update are autograd/optimizer machinery with no forward-kernel
            # equivalent; only forward_batch compute is executed per task.
            _loss, log = forward_batch_jax(self.params, demo, self.recurrence, self.entropy_coef)
            logs.append(log)
        return logs


# --------------------------------------------------------------------------------------
# deterministic parameter init (shapes implied by ACModel(image_dim, memory_dim, instr_dim))
# --------------------------------------------------------------------------------------
def init_params(key):
    ks = jax.random.split(key, 10)

    def w(k, shape, scale=0.1):
        return (scale * jax.random.normal(k, shape)).astype(jnp.float32)

    conv1_w = w(ks[0], (2, 2, IMG_C, C1))                 # (kh, kw, cin, cout)
    conv1_b = jnp.zeros((C1,), jnp.float32)
    conv1_wbig, conv1_bbig = _build_conv1_big(conv1_w, conv1_b)

    actor_w2 = w(ks[8], (ACTOR_HIDDEN, N_ACTIONS))
    # pad actor output to 128 lanes; padded bias is a large FINITE negative so p*logp stays 0
    actor_w2_pad = jnp.zeros((ACTOR_HIDDEN, LOGITS_PAD), jnp.float32).at[:, :N_ACTIONS].set(actor_w2)
    actor_b2_pad = jnp.full((1, LOGITS_PAD), -1e9, jnp.float32).at[:, :N_ACTIONS].set(0.0)

    return dict(
        conv1_wbig=conv1_wbig,                             # (147, 1024) pooling-group layout
        conv1_bbig=conv1_bbig,                             # (1, 1024)
        conv2_w=w(ks[1], (POOL_COLS, IMAGE_DIM)),          # (144, 32), (kh,kw,cin) flatten order
        conv2_b=jnp.zeros((1, IMAGE_DIM), jnp.float32),
        word_emb=w(ks[2], (VOCAB, INSTR_DIM)),
        gru_wx=w(ks[3], (INSTR_DIM, 3 * INSTR_DIM)),
        gru_wh=w(ks[4], (INSTR_DIM, 3 * INSTR_DIM)),
        gru_bx=jnp.zeros((1, 3 * INSTR_DIM), jnp.float32),
        gru_bh=jnp.zeros((1, 3 * INSTR_DIM), jnp.float32),
        # LSTM gate column order is (i, f, o, g) so one sigmoid covers a contiguous 3*Dm slice
        lstm_wih=w(ks[5], (IMAGE_DIM, 4 * MEMORY_DIM)),
        lstm_whh=w(ks[6], (MEMORY_DIM, 4 * MEMORY_DIM)),
        lstm_bih=jnp.zeros((1, 4 * MEMORY_DIM), jnp.float32),
        lstm_bhh=jnp.zeros((1, 4 * MEMORY_DIM), jnp.float32),
        # actor first-layer weight stored pre-split (h part / instr part) to avoid in-kernel concat
        actor_w1h=w(ks[7], (MEMORY_DIM, ACTOR_HIDDEN)),
        actor_w1i=w(ks[9], (INSTR_DIM, ACTOR_HIDDEN)),
        actor_b1=jnp.zeros((1, ACTOR_HIDDEN), jnp.float32),
        actor_w2=actor_w2_pad,
        actor_b2=actor_b2_pad,
    )


if __name__ == "__main__":
    key = jax.random.PRNGKey(0)
    k_img, k_tok, k_act, k_param = jax.random.split(key, 4)

    num_frames = 32        # two episodes of length 16
    n_episodes = 2
    recurrence = 2         # -> Bstep = 16 -> batch tile 8 x 2 (exercises the parallel batch axis)

    images = jax.random.uniform(k_img, (num_frames, IMG_H, IMG_W, IMG_C), jnp.float32)
    instr_tokens = jax.random.randint(k_tok, (n_episodes, INSTR_LEN), 0, VOCAB)
    actions = jax.random.randint(k_act, (num_frames,), 0, N_ACTIONS)
    mask = np.ones((num_frames,), np.float32)
    mask[[0, 16]] = 0.0                                  # episode starting indices
    mask = jnp.asarray(mask)
    episode_ids = jnp.asarray(np.repeat(np.arange(n_episodes), num_frames // n_episodes),
                              dtype=jnp.int32)

    demo = dict(images=images, instr_tokens=instr_tokens, actions=actions,
                mask=mask, episode_ids=episode_ids)

    params = init_params(k_param)
    learner = MetaLearnerPallas(params, task_num=2, recurrence=recurrence, entropy_coef=0.01)

    loss, log = forward_batch_jax(params, demo, recurrence, 0.01)
    jax.block_until_ready(loss)
    logs = learner.forward(demo)
    assert len(logs) == 2 and all(np.isfinite(list(l.values())).all() for l in logs)
    assert np.isfinite(float(loss)) and np.isfinite(list(log.values())).all()
    print("KERNEL_OK")
</pallas_src>

<mosaic_0001>
module attributes {stable_mosaic.version = 11 : i64} {
  func.func @fused_image_encoder_kernel(%arg0: i32, %arg1: memref<32x147xf32, #tpu.memory_space<vmem>>, %arg2: memref<147x1024xf32, #tpu.memory_space<vmem>>, %arg3: memref<1x1024xf32, #tpu.memory_space<vmem>>, %arg4: memref<144x32xf32, #tpu.memory_space<vmem>>, %arg5: memref<1x32xf32, #tpu.memory_space<vmem>>, %arg6: memref<32x32xf32, #tpu.memory_space<vmem>>) attributes {dimension_semantics = [#tpu.dimension_semantics<parallel>], iteration_bounds = array<i64: 1>, scalar_prefetch = 0 : i64, scratch_operands = 0 : i64, tpu.core_type = #tpu.core_type<tc>, window_params = [{transform_indices = @transform_0, window_bounds = array<i64: 32, 147>}, {pipeline_mode = #tpu.pipeline_mode<synchronous>, transform_indices = @transform_1, window_bounds = array<i64: 147, 1024>}, {pipeline_mode = #tpu.pipeline_mode<synchronous>, transform_indices = @transform_2, window_bounds = array<i64: 1, 1024>}, {pipeline_mode = #tpu.pipeline_mode<synchronous>, transform_indices = @transform_3, window_bounds = array<i64: 144, 32>}, {pipeline_mode = #tpu.pipeline_mode<synchronous>, transform_indices = @transform_4, window_bounds = array<i64: 1, 32>}, {transform_indices = @transform_5, window_bounds = array<i64: 32, 32>}]} {
    %c0 = arith.constant 0 : index
    %c0_0 = arith.constant 0 : index
    %0 = vector.load %arg1[%c0, %c0_0] : memref<32x147xf32, #tpu.memory_space<vmem>>, vector<32x147xf32>
    %c0_1 = arith.constant 0 : index
    %c0_2 = arith.constant 0 : index
    %1 = vector.load %arg2[%c0_1, %c0_2] : memref<147x1024xf32, #tpu.memory_space<vmem>>, vector<147x1024xf32>
    %cst = arith.constant dense<0.000000e+00> : vector<32x1024xf32>
    %2 = tpu.matmul %0, %1, %cst {dimension_numbers = #tpu.dot_dimension_numbers<[1], [0], [0], [1], [0, 0, 1, 1], [], []>} : vector<32x147xf32>, vector<147x1024xf32>, vector<32x1024xf32> -> vector<32x1024xf32>
    %c0_3 = arith.constant 0 : index
    %c0_4 = arith.constant 0 : index
    %3 = vector.load %arg3[%c0_3, %c0_4] : memref<1x1024xf32, #tpu.memory_space<vmem>>, vector<1x1024xf32>
    %4 = vector.broadcast %3 : vector<1x1024xf32> to vector<32x1024xf32>
    %5 = arith.addf %2, %4 : vector<32x1024xf32>
    %cst_5 = arith.constant 0.000000e+00 : f32
    %6 = vector.broadcast %cst_5 : f32 to vector<32x1024xf32>
    %7 = arith.maximumf %5, %6 : vector<32x1024xf32>
    %8 = vector.extract_strided_slice %7 {offsets = [0, 0], sizes = [32, 144], strides = [1, 1]} : vector<32x1024xf32> to vector<32x144xf32>
    %9 = vector.extract_strided_slice %7 {offsets = [0, 256], sizes = [32, 144], strides = [1, 1]} : vector<32x1024xf32> to vector<32x144xf32>
    %10 = vector.extract_strided_slice %7 {offsets = [0, 512], sizes = [32, 144], strides = [1, 1]} : vector<32x1024xf32> to vector<32x144xf32>
    %11 = vector.extract_strided_slice %7 {offsets = [0, 768], sizes = [32, 144], strides = [1, 1]} : vector<32x1024xf32> to vector<32x144xf32>
    %12 = arith.maximumf %8, %9 : vector<32x144xf32>
    %13 = arith.maximumf %10, %11 : vector<32x144xf32>
    %14 = arith.maximumf %12, %13 : vector<32x144xf32>
    %c0_6 = arith.constant 0 : index
    %c0_7 = arith.constant 0 : index
    %15 = vector.load %arg4[%c0_6, %c0_7] : memref<144x32xf32, #tpu.memory_space<vmem>>, vector<144x32xf32>
    %cst_8 = arith.constant dense<0.000000e+00> : vector<32x32xf32>
    %16 = tpu.matmul %14, %15, %cst_8 {dimension_numbers = #tpu.dot_dimension_numbers<[1], [0], [0], [1], [0, 0, 1, 1], [], []>} : vector<32x144xf32>, vector<144x32xf32>, vector<32x32xf32> -> vector<32x32xf32>
    %c0_9 = arith.constant 0 : index
    %c0_10 = arith.constant 0 : index
    %17 = vector.load %arg5[%c0_9, %c0_10] : memref<1x32xf32, #tpu.memory_space<vmem>>, vector<1x32xf32>
    %18 = vector.broadcast %17 : vector<1x32xf32> to vector<32x32xf32>
    %19 = arith.addf %16, %18 : vector<32x32xf32>
    %cst_11 = arith.constant 0.000000e+00 : f32
    %20 = vector.broadcast %cst_11 : f32 to vector<32x32xf32>
    %21 = arith.maximumf %19, %20 : vector<32x32xf32>
    %c0_12 = arith.constant 0 : index
    %c0_13 = arith.constant 0 : index
    %22 = vector.load %arg6[%c0_12, %c0_13] : memref<32x32xf32, #tpu.memory_space<vmem>>, vector<32x32xf32>
    tpu.vector_store %arg6[%c0_12, %c0_13], %21 {strides = array<i32>} : memref<32x32xf32, #tpu.memory_space<vmem>>, vector<32x32xf32>,
    return
  }
  func.func @transform_0(%arg0: i32) -> (i32, i32) {
    %c0_i32 = arith.constant 0 : i32
    %c0_i32_0 = arith.constant 0 : i32
    return %arg0, %c0_i32 : i32, i32
  }
  func.func @transform_1(%arg0: i32) -> (i32, i32) {
    %c0_i32 = arith.constant 0 : i32
    %c0_i32_0 = arith.constant 0 : i32
    %c0_i32_1 = arith.constant 0 : i32
    return %c0_i32, %c0_i32_0 : i32, i32
  }
  func.func @transform_2(%arg0: i32) -> (i32, i32) {
    %c0_i32 = arith.constant 0 : i32
    %c0_i32_0 = arith.constant 0 : i32
    %c0_i32_1 = arith.constant 0 : i32
    return %c0_i32, %c0_i32_0 : i32, i32
  }
  func.func @transform_3(%arg0: i32) -> (i32, i32) {
    %c0_i32 = arith.constant 0 : i32
    %c0_i32_0 = arith.constant 0 : i32
    %c0_i32_1 = arith.constant 0 : i32
    return %c0_i32, %c0_i32_0 : i32, i32
  }
  func.func @transform_4(%arg0: i32) -> (i32, i32) {
    %c0_i32 = arith.constant 0 : i32
    %c0_i32_0 = arith.constant 0 : i32
    %c0_i32_1 = arith.constant 0 : i32
    return %c0_i32, %c0_i32_0 : i32, i32
  }
  func.func @transform_5(%arg0: i32) -> (i32, i32) {
    %c0_i32 = arith.constant 0 : i32
    %c0_i32_0 = arith.constant 0 : i32
    return %arg0, %c0_i32 : i32, i32
  }
}

module attributes {stable_mosaic.version = 11 : i64} {
  func.func @gru_recurrence_kernel(%arg0: memref<8x2x96xf32, #tpu.memory_space<vmem>>, %arg1: memref<32x96xf32, #tpu.memory_space<vmem>>, %arg2: memref<1x96xf32, #tpu.memory_space<vmem>>, %arg3: memref<2x32xf32, #tpu.memory_space<vmem>>) attributes {dimension_semantics = [], scalar_prefetch = 0 : i64, scratch_operands = 0 : i64, tpu.core_type = #tpu.core_type<tc>} {
    %c0 = arith.constant 0 : index
    %c0_0 = arith.constant 0 : index
    %0 = vector.load %arg1[%c0, %c0_0] : memref<32x96xf32, #tpu.memory_space<vmem>>, vector<32x96xf32>
    %c0_1 = arith.constant 0 : index
    %c0_2 = arith.constant 0 : index
    %1 = vector.load %arg2[%c0_1, %c0_2] : memref<1x96xf32, #tpu.memory_space<vmem>>, vector<1x96xf32>
    %cst = arith.constant 0.000000e+00 : f32
    %2 = vector.broadcast %cst : f32 to vector<2x32xf32>
    %c0_3 = arith.constant 0 : index
    %c0_4 = arith.constant 0 : index
    %c0_5 = arith.constant 0 : index
    %3 = vector.load %arg0[%c0_3, %c0_4, %c0_5] : memref<8x2x96xf32, #tpu.memory_space<vmem>>, vector<1x2x96xf32>
    %4 = vector.shape_cast %3 : vector<1x2x96xf32> to vector<2x96xf32>
    %cst_6 = arith.constant dense<0.000000e+00> : vector<2x96xf32>
    %5 = tpu.matmul %2, %0, %cst_6 {dimension_numbers = #tpu.dot_dimension_numbers<[1], [0], [0], [1], [0, 0, 1, 1], [], []>} : vector<2x32xf32>, vector<32x96xf32>, vector<2x96xf32> -> vector<2x96xf32>
    %6 = vector.broadcast %1 : vector<1x96xf32> to vector<2x96xf32>
    %7 = arith.addf %5, %6 : vector<2x96xf32>
    %8 = vector.extract_strided_slice %4 {offsets = [0, 0], sizes = [2, 32], strides = [1, 1]} : vector<2x96xf32> to vector<2x32xf32>
    %9 = vector.extract_strided_slice %7 {offsets = [0, 0], sizes = [2, 32], strides = [1, 1]} : vector<2x96xf32> to vector<2x32xf32>
    %10 = arith.addf %8, %9 : vector<2x32xf32>
    %11 = arith.negf %10 : vector<2x32xf32>
    %12 = math.exp %11 : vector<2x32xf32>
    %cst_7 = arith.constant 1.000000e+00 : f32
    %13 = vector.broadcast %cst_7 : f32 to vector<2x32xf32>
    %14 = arith.addf %13, %12 : vector<2x32xf32>
    %15 = arith.divf %13, %14 : vector<2x32xf32>
    %16 = vector.extract_strided_slice %4 {offsets = [0, 32], sizes = [2, 32], strides = [1, 1]} : vector<2x96xf32> to vector<2x32xf32>
    %17 = vector.extract_strided_slice %7 {offsets = [0, 32], sizes = [2, 32], strides = [1, 1]} : vector<2x96xf32> to vector<2x32xf32>
    %18 = arith.addf %16, %17 : vector<2x32xf32>
    %19 = arith.negf %18 : vector<2x32xf32>
    %20 = math.exp %19 : vector<2x32xf32>
    %cst_8 = arith.constant 1.000000e+00 : f32
    %21 = vector.broadcast %cst_8 : f32 to vector<2x32xf32>
    %22 = arith.addf %21, %20 : vector<2x32xf32>
    %23 = arith.divf %21, %22 : vector<2x32xf32>
    %24 = vector.extract_strided_slice %4 {offsets = [0, 64], sizes = [2, 32], strides = [1, 1]} : vector<2x96xf32> to vector<2x32xf32>
    %25 = vector.extract_strided_slice %7 {offsets = [0, 64], sizes = [2, 32], strides = [1, 1]} : vector<2x96xf32> to vector<2x32xf32>
    %26 = arith.mulf %15, %25 : vector<2x32xf32>
    %27 = arith.addf %24, %26 : vector<2x32xf32>
    %28 = math.tanh %27 : vector<2x32xf32>
    %cst_9 = arith.constant 1.000000e+00 : f32
    %29 = vector.broadcast %cst_9 : f32 to vector<2x32xf32>
    %30 = arith.subf %29, %23 : vector<2x32xf32>
    %31 = arith.mulf %30, %28 : vector<2x32xf32>
    %32 = arith.mulf %23, %2 : vector<2x32xf32>
    %33 = arith.addf %31, %32 : vector<2x32xf32>
    %c1 = arith.constant 1 : index
    %c0_10 = arith.constant 0 : index
    %c0_11 = arith.constant 0 : index
    %34 = vector.load %arg0[%c1, %c0_10, %c0_11] : memref<8x2x96xf32, #tpu.memory_space<vmem>>, vector<1x2x96xf32>
    %35 = vector.shape_cast %34 : vector<1x2x96xf32> to vector<2x96xf32>
    %cst_12 = arith.constant dense<0.000000e+00> : vector<2x96xf32>
    %36 = tpu.matmul %33, %0, %cst_12 {dimension_numbers = #tpu.dot_dimension_numbers<[1], [0], [0], [1], [0, 0, 1, 1], [], []>} : vector<2x32xf32>, vector<32x96xf32>, vector<2x96xf32> -> vector<2x96xf32>
    %37 = vector.broadcast %1 : vector<1x96xf32> to vector<2x96xf32>
    %38 = arith.addf %36, %37 : vector<2x96xf32>
    %39 = vector.extract_strided_slice %35 {offsets = [0, 0], sizes = [2, 32], strides = [1, 1]} : vector<2x96xf32> to vector<2x32xf32>
    %40 = vector.extract_strided_slice %38 {offsets = [0, 0], sizes = [2, 32], strides = [1, 1]} : vector<2x96xf32> to vector<2x32xf32>
    %41 = arith.addf %39, %40 : vector<2x32xf32>
    %42 = arith.negf %41 : vector<2x32xf32>
    %43 = math.exp %42 : vector<2x32xf32>
    %cst_13 = arith.constant 1.000000e+00 : f32
    %44 = vector.broadcast %cst_13 : f32 to vector<2x32xf32>
    %45 = arith.addf %44, %43 : vector<2x32xf32>
    %46 = arith.divf %44, %45 : vector<2x32xf32>
    %47 = vector.extract_strided_slice %35 {offsets = [0, 32], sizes = [2, 32], strides = [1, 1]} : vector<2x96xf32> to vector<2x32xf32>
    %48 = vector.extract_strided_slice %38 {offsets = [0, 32], sizes = [2, 32], strides = [1, 1]} : vector<2x96xf32> to vector<2x32xf32>
    %49 = arith.addf %47, %48 : vector<2x32xf32>
    %50 = arith.negf %49 : vector<2x32xf32>
    %51 = math.exp %50 : vector<2x32xf32>
    %cst_14 = arith.constant 1.000000e+00 : f32
    %52 = vector.broadcast %cst_14 : f32 to vector<2x32xf32>
    %53 = arith.addf %52, %51 : vector<2x32xf32>
    %54 = arith.divf %52, %53 : vector<2x32xf32>
    %55 = vector.extract_strided_slice %35 {offsets = [0, 64], sizes = [2, 32], strides = [1, 1]} : vector<2x96xf32> to vector<2x32xf32>
    %56 = vector.extract_strided_slice %38 {offsets = [0, 64], sizes = [2, 32], strides = [1, 1]} : vector<2x96xf32> to vector<2x32xf32>
    %57 = arith.mulf %46, %56 : vector<2x32xf32>
    %58 = arith.addf %55, %57 : vector<2x32xf32>
    %59 = math.tanh %58 : vector<2x32xf32>
    %cst_15 = arith.constant 1.000000e+00 : f32
    %60 = vector.broadcast %cst_15 : f32 to vector<2x32xf32>
    %61 = arith.subf %60, %54 : vector<2x32xf32>
    %62 = arith.mulf %61, %59 : vector<2x32xf32>
    %63 = arith.mulf %54, %33 : vector<2x32xf32>
    %64 = arith.addf %62, %63 : vector<2x32xf32>
    %c2 = arith.constant 2 : index
    %c0_16 = arith.constant 0 : index
    %c0_17 = arith.constant 0 : index
    %65 = vector.load %arg0[%c2, %c0_16, %c0_17] : memref<8x2x96xf32, #tpu.memory_space<vmem>>, vector<1x2x96xf32>
    %66 = vector.shape_cast %65 : vector<1x2x96xf32> to vector<2x96xf32>
    %cst_18 = arith.constant dense<0.000000e+00> : vector<2x96xf32>
    %67 = tpu.matmul %64, %0, %cst_18 {dimension_numbers = #tpu.dot_dimension_numbers<[1], [0], [0], [1], [0, 0, 1, 1], [], []>} : vector<2x32xf32>, vector<32x96xf32>, vector<2x96xf32> -> vector<2x96xf32>
    %68 = vector.broadcast %1 : vector<1x96xf32> to vector<2x96xf32>
    %69 = arith.addf %67, %68 : vector<2x96xf32>
    %70 = vector.extract_strided_slice %66 {offsets = [0, 0], sizes = [2, 32], strides = [1, 1]} : vector<2x96xf32> to vector<2x32xf32>
    %71 = vector.extract_strided_slice %69 {offsets = [0, 0], sizes = [2, 32], strides = [1, 1]} : vector<2x96xf32> to vector<2x32xf32>
    %72 = arith.addf %70, %71 : vector<2x32xf32>
    %73 = arith.negf %72 : vector<2x32xf32>
    %74 = math.exp %73 : vector<2x32xf32>
    %cst_19 = arith.constant 1.000000e+00 : f32
    %75 = vector.broadcast %cst_19 : f32 to vector<2x32xf32>
    %76 = arith.addf %75, %74 : vector<2x32xf32>
    %77 = arith.divf %75, %76 : vector<2x32xf32>
    %78 = vector.extract_strided_slice %66 {offsets = [0, 32], sizes = [2, 32], strides = [1, 1]} : vector<2x96xf32> to vector<2x32xf32>
    %79 = vector.extract_strided_slice %69 {offsets = [0, 32], sizes = [2, 32], strides = [1, 1]} : vector<2x96xf32> to vector<2x32xf32>
    %80 = arith.addf %78, %79 : vector<2x32xf32>
    %81 = arith.negf %80 : vector<2x32xf32>
    %82 = math.exp %81 : vector<2x32xf32>
    %cst_20 = arith.constant 1.000000e+00 : f32
    %83 = vector.broadcast %cst_20 : f32 to vector<2x32xf32>
    %84 = arith.addf %83, %82 : vector<2x32xf32>
    %85 = arith.divf %83, %84 : vector<2x32xf32>
    %86 = vector.extract_strided_slice %66 {offsets = [0, 64], sizes = [2, 32], strides = [1, 1]} : vector<2x96xf32> to vector<2x32xf32>
    %87 = vector.extract_strided_slice %69 {offsets = [0, 64], sizes = [2, 32], strides = [1, 1]} : vector<2x96xf32> to vector<2x32xf32>
    %88 = arith.mulf %77, %87 : vector<2x32xf32>
    %89 = arith.addf %86, %88 : vector<2x32xf32>
    %90 = math.tanh %89 : vector<2x32xf32>
    %cst_21 = arith.constant 1.000000e+00 : f32
    %91 = vector.broadcast %cst_21 : f32 to vector<2x32xf32>
    %92 = arith.subf %91, %85 : vector<2x32xf32>
    %93 = arith.mulf %92, %90 : vector<2x32xf32>
    %94 = arith.mulf %85, %64 : vector<2x32xf32>
    %95 = arith.addf %93, %94 : vector<2x32xf32>
    %c3 = arith.constant 3 : index
    %c0_22 = arith.constant 0 : index
    %c0_23 = arith.constant 0 : index
    %96 = vector.load %arg0[%c3, %c0_22, %c0_23] : memref<8x2x96xf32, #tpu.memory_space<vmem>>, vector<1x2x96xf32>
    %97 = vector.shape_cast %96 : vector<1x2x96xf32> to vector<2x96xf32>
    %cst_24 = arith.constant dense<0.000000e+00> : vector<2x96xf32>
    %98 = tpu.matmul %95, %0, %cst_24 {dimension_numbers = #tpu.dot_dimension_numbers<[1], [0], [0], [1], [0, 0, 1, 1], [], []>} : vector<2x32xf32>, vector<32x96xf32>, vector<2x96xf32> -> vector<2x96xf32>
    %99 = vector.broadcast %1 : vector<1x96xf32> to vector<2x96xf32>
    %100 = arith.addf %98, %99 : vector<2x96xf32>
    %101 = vector.extract_strided_slice %97 {offsets = [0, 0], sizes = [2, 32], strides = [1, 1]} : vector<2x96xf32> to vector<2x32xf32>
    %102 = vector.extract_strided_slice %100 {offsets = [0, 0], sizes = [2, 32], strides = [1, 1]} : vector<2x96xf32> to vector<2x32xf32>
    %103 = arith.addf %101, %102 : vector<2x32xf32>
    %104 = arith.negf %103 : vector<2x32xf32>
    %105 = math.exp %104 : vector<2x32xf32>
    %cst_25 = arith.constant 1.000000e+00 : f32
    %106 = vector.broadcast %cst_25 : f32 to vector<2x32xf32>
    %107 = arith.addf %106, %105 : vector<2x32xf32>
    %108 = arith.divf %106, %107 : vector<2x32xf32>
    %109 = vector.extract_strided_slice %97 {offsets = [0, 32], sizes = [2, 32], strides = [1, 1]} : vector<2x96xf32> to vector<2x32xf32>
    %110 = vector.extract_strided_slice %100 {offsets = [0, 32], sizes = [2, 32], strides = [1, 1]} : vector<2x96xf32> to vector<2x32xf32>
    %111 = arith.addf %109, %110 : vector<2x32xf32>
    %112 = arith.negf %111 : vector<2x32xf32>
    %113 = math.exp %112 : vector<2x32xf32>
    %cst_26 = arith.constant 1.000000e+00 : f32
    %114 = vector.broadcast %cst_26 : f32 to vector<2x32xf32>
    %115 = arith.addf %114, %113 : vector<2x32xf32>
    %116 = arith.divf %114, %115 : vector<2x32xf32>
    %117 = vector.extract_strided_slice %97 {offsets = [0, 64], sizes = [2, 32], strides = [1, 1]} : vector<2x96xf32> to vector<2x32xf32>
    %118 = vector.extract_strided_slice %100 {offsets = [0, 64], sizes = [2, 32], strides = [1, 1]} : vector<2x96xf32> to vector<2x32xf32>
    %119 = arith.mulf %108, %118 : vector<2x32xf32>
    %120 = arith.addf %117, %119 : vector<2x32xf32>
    %121 = math.tanh %120 : vector<2x32xf32>
    %cst_27 = arith.constant 1.000000e+00 : f32
    %122 = vector.broadcast %cst_27 : f32 to vector<2x32xf32>
    %123 = arith.subf %122, %116 : vector<2x32xf32>
    %124 = arith.mulf %123, %121 : vector<2x32xf32>
    %125 = arith.mulf %116, %95 : vector<2x32xf32>
    %126 = arith.addf %124, %125 : vector<2x32xf32>
    %c4 = arith.constant 4 : index
    %c0_28 = arith.constant 0 : index
    %c0_29 = arith.constant 0 : index
    %127 = vector.load %arg0[%c4, %c0_28, %c0_29] : memref<8x2x96xf32, #tpu.memory_space<vmem>>, vector<1x2x96xf32>
    %128 = vector.shape_cast %127 : vector<1x2x96xf32> to vector<2x96xf32>
    %cst_30 = arith.constant dense<0.000000e+00> : vector<2x96xf32>
    %129 = tpu.matmul %126, %0, %cst_30 {dimension_numbers = #tpu.dot_dimension_numbers<[1], [0], [0], [1], [0, 0, 1, 1], [], []>} : vector<2x32xf32>, vector<32x96xf32>, vector<2x96xf32> -> vector<2x96xf32>
    %130 = vector.broadcast %1 : vector<1x96xf32> to vector<2x96xf32>
    %131 = arith.addf %129, %130 : vector<2x96xf32>
    %132 = vector.extract_strided_slice %128 {offsets = [0, 0], sizes = [2, 32], strides = [1, 1]} : vector<2x96xf32> to vector<2x32xf32>
    %133 = vector.extract_strided_slice %131 {offsets = [0, 0], sizes = [2, 32], strides = [1, 1]} : vector<2x96xf32> to vector<2x32xf32>
    %134 = arith.addf %132, %133 : vector<2x32xf32>
    %135 = arith.negf %134 : vector<2x32xf32>
    %136 = math.exp %135 : vector<2x32xf32>
    %cst_31 = arith.constant 1.000000e+00 : f32
    %137 = vector.broadcast %cst_31 : f32 to vector<2x32xf32>
    %138 = arith.addf %137, %136 : vector<2x32xf32>
    %139 = arith.divf %137, %138 : vector<2x32xf32>
    %140 = vector.extract_strided_slice %128 {offsets = [0, 32], sizes = [2, 32], strides = [1, 1]} : vector<2x96xf32> to vector<2x32xf32>
    %141 = vector.extract_strided_slice %131 {offsets = [0, 32], sizes = [2, 32], strides = [1, 1]} : vector<2x96xf32> to vector<2x32xf32>
    %142 = arith.addf %140, %141 : vector<2x32xf32>
    %143 = arith.negf %142 : vector<2x32xf32>
    %144 = math.exp %143 : vector<2x32xf32>
    %cst_32 = arith.constant 1.000000e+00 : f32
    %145 = vector.broadcast %cst_32 : f32 to vector<2x32xf32>
    %146 = arith.addf %145, %144 : vector<2x32xf32>
    %147 = arith.divf %145, %146 : vector<2x32xf32>
    %148 = vector.extract_strided_slice %128 {offsets = [0, 64], sizes = [2, 32], strides = [1, 1]} : vector<2x96xf32> to vector<2x32xf32>
    %149 = vector.extract_strided_slice %131 {offsets = [0, 64], sizes = [2, 32], strides = [1, 1]} : vector<2x96xf32> to vector<2x32xf32>
    %150 = arith.mulf %139, %149 : vector<2x32xf32>
    %151 = arith.addf %148, %150 : vector<2x32xf32>
    %152 = math.tanh %151 : vector<2x32xf32>
    %cst_33 = arith.constant 1.000000e+00 : f32
    %153 = vector.broadcast %cst_33 : f32 to vector<2x32xf32>
    %154 = arith.subf %153, %147 : vector<2x32xf32>
    %155 = arith.mulf %154, %152 : vector<2x32xf32>
    %156 = arith.mulf %147, %126 : vector<2x32xf32>
    %157 = arith.addf %155, %156 : vector<2x32xf32>
    %c5 = arith.constant 5 : index
    %c0_34 = arith.constant 0 : index
    %c0_35 = arith.constant 0 : index
    %158 = vector.load %arg0[%c5, %c0_34, %c0_35] : memref<8x2x96xf32, #tpu.memory_space<vmem>>, vector<1x2x96xf32>
    %159 = vector.shape_cast %158 : vector<1x2x96xf32> to vector<2x96xf32>
    %cst_36 = arith.constant dense<0.000000e+00> : vector<2x96xf32>
    %160 = tpu.matmul %157, %0, %cst_36 {dimension_numbers = #tpu.dot_dimension_numbers<[1], [0], [0], [1], [0, 0, 1, 1], [], []>} : vector<2x32xf32>, vector<32x96xf32>, vector<2x96xf32> -> vector<2x96xf32>
    %161 = vector.broadcast %1 : vector<1x96xf32> to vector<2x96xf32>
    %162 = arith.addf %160, %161 : vector<2x96xf32>
    %163 = vector.extract_strided_slice %159 {offsets = [0, 0], sizes = [2, 32], strides = [1, 1]} : vector<2x96xf32> to vector<2x32xf32>
    %164 = vector.extract_strided_slice %162 {offsets = [0, 0], sizes = [2, 32], strides = [1, 1]} : vector<2x96xf32> to vector<2x32xf32>
    %165 = arith.addf %163, %164 : vector<2x32xf32>
    %166 = arith.negf %165 : vector<2x32xf32>
    %167 = math.exp %166 : vector<2x32xf32>
    %cst_37 = arith.constant 1.000000e+00 : f32
    %168 = vector.broadcast %cst_37 : f32 to vector<2x32xf32>
    %169 = arith.addf %168, %167 : vector<2x32xf32>
    %170 = arith.divf %168, %169 : vector<2x32xf32>
    %171 = vector.extract_strided_slice %159 {offsets = [0, 32], sizes = [2, 32], strides = [1, 1]} : vector<2x96xf32> to vector<2x32xf32>
    %172 = vector.extract_strided_slice %162 {offsets = [0, 32], sizes = [2, 32], strides = [1, 1]} : vector<2x96xf32> to vector<2x32xf32>
    %173 = arith.addf %171, %172 : vector<2x32xf32>
    %174 = arith.negf %173 : vector<2x32xf32>
    %175 = math.exp %174 : vector<2x32xf32>
    %cst_38 = arith.constant 1.000000e+00 : f32
    %176 = vector.broadcast %cst_38 : f32 to vector<2x32xf32>
    %177 = arith.addf %176, %175 : vector<2x32xf32>
    %178 = arith.divf %176, %177 : vector<2x32xf32>
    %179 = vector.extract_strided_slice %159 {offsets = [0, 64], sizes = [2, 32], strides = [1, 1]} : vector<2x96xf32> to vector<2x32xf32>
    %180 = vector.extract_strided_slice %162 {offsets = [0, 64], sizes = [2, 32], strides = [1, 1]} : vector<2x96xf32> to vector<2x32xf32>
    %181 = arith.mulf %170, %180 : vector<2x32xf32>
    %182 = arith.addf %179, %181 : vector<2x32xf32>
    %183 = math.tanh %182 : vector<2x32xf32>
    %cst_39 = arith.constant 1.000000e+00 : f32
    %184 = vector.broadcast %cst_39 : f32 to vector<2x32xf32>
    %185 = arith.subf %184, %178 : vector<2x32xf32>
    %186 = arith.mulf %185, %183 : vector<2x32xf32>
    %187 = arith.mulf %178, %157 : vector<2x32xf32>
    %188 = arith.addf %186, %187 : vector<2x32xf32>
    %c6 = arith.constant 6 : index
    %c0_40 = arith.constant 0 : index
    %c0_41 = arith.constant 0 : index
    %189 = vector.load %arg0[%c6, %c0_40, %c0_41] : memref<8x2x96xf32, #tpu.memory_space<vmem>>, vector<1x2x96xf32>
    %190 = vector.shape_cast %189 : vector<1x2x96xf32> to vector<2x96xf32>
    %cst_42 = arith.constant dense<0.000000e+00> : vector<2x96xf32>
    %191 = tpu.matmul %188, %0, %cst_42 {dimension_numbers = #tpu.dot_dimension_numbers<[1], [0], [0], [1], [0, 0, 1, 1], [], []>} : vector<2x32xf32>, vector<32x96xf32>, vector<2x96xf32> -> vector<2x96xf32>
    %192 = vector.broadcast %1 : vector<1x96xf32> to vector<2x96xf32>
    %193 = arith.addf %191, %192 : vector<2x96xf32>
    %194 = vector.extract_strided_slice %190 {offsets = [0, 0], sizes = [2, 32], strides = [1, 1]} : vector<2x96xf32> to vector<2x32xf32>
    %195 = vector.extract_strided_slice %193 {offsets = [0, 0], sizes = [2, 32], strides = [1, 1]} : vector<2x96xf32> to vector<2x32xf32>
    %196 = arith.addf %194, %195 : vector<2x32xf32>
    %197 = arith.negf %196 : vector<2x32xf32>
    %198 = math.exp %197 : vector<2x32xf32>
    %cst_43 = arith.constant 1.000000e+00 : f32
    %199 = vector.broadcast %cst_43 : f32 to vector<2x32xf32>
    %200 = arith.addf %199, %198 : vector<2x32xf32>
    %201 = arith.divf %199, %200 : vector<2x32xf32>
    %202 = vector.extract_strided_slice %190 {offsets = [0, 32], sizes = [2, 32], strides = [1, 1]} : vector<2x96xf32> to vector<2x32xf32>
    %203 = vector.extract_strided_slice %193 {offsets = [0, 32], sizes = [2, 32], strides = [1, 1]} : vector<2x96xf32> to vector<2x32xf32>
    %204 = arith.addf %202, %203 : vector<2x32xf32>
    %205 = arith.negf %204 : vector<2x32xf32>
    %206 = math.exp %205 : vector<2x32xf32>
    %cst_44 = arith.constant 1.000000e+00 : f32
    %207 = vector.broadcast %cst_44 : f32 to vector<2x32xf32>
    %208 = arith.addf %207, %206 : vector<2x32xf32>
    %209 = arith.divf %207, %208 : vector<2x32xf32>
    %210 = vector.extract_strided_slice %190 {offsets = [0, 64], sizes = [2, 32], strides = [1, 1]} : vector<2x96xf32> to vector<2x32xf32>
    %211 = vector.extract_strided_slice %193 {offsets = [0, 64], sizes = [2, 32], strides = [1, 1]} : vector<2x96xf32> to vector<2x32xf32>
    %212 = arith.mulf %201, %211 : vector<2x32xf32>
    %213 = arith.addf %210, %212 : vector<2x32xf32>
    %214 = math.tanh %213 : vector<2x32xf32>
    %cst_45 = arith.constant 1.000000e+00 : f32
    %215 = vector.broadcast %cst_45 : f32 to vector<2x32xf32>
    %216 = arith.subf %215, %209 : vector<2x32xf32>
    %217 = arith.mulf %216, %214 : vector<2x32xf32>
    %218 = arith.mulf %209, %188 : vector<2x32xf32>
    %219 = arith.addf %217, %218 : vector<2x32xf32>
    %c7 = arith.constant 7 : index
    %c0_46 = arith.constant 0 : index
    %c0_47 = arith.constant 0 : index
    %220 = vector.load %arg0[%c7, %c0_46, %c0_47] : memref<8x2x96xf32, #tpu.memory_space<vmem>>, vector<1x2x96xf32>
    %221 = vector.shape_cast %220 : vector<1x2x96xf32> to vector<2x96xf32>
    %cst_48 = arith.constant dense<0.000000e+00> : vector<2x96xf32>
    %222 = tpu.matmul %219, %0, %cst_48 {dimension_numbers = #tpu.dot_dimension_numbers<[1], [0], [0], [1], [0, 0, 1, 1], [], []>} : vector<2x32xf32>, vector<32x96xf32>, vector<2x96xf32> -> vector<2x96xf32>
    %223 = vector.broadcast %1 : vector<1x96xf32> to vector<2x96xf32>
    %224 = arith.addf %222, %223 : vector<2x96xf32>
    %225 = vector.extract_strided_slice %221 {offsets = [0, 0], sizes = [2, 32], strides = [1, 1]} : vector<2x96xf32> to vector<2x32xf32>
    %226 = vector.extract_strided_slice %224 {offsets = [0, 0], sizes = [2, 32], strides = [1, 1]} : vector<2x96xf32> to vector<2x32xf32>
    %227 = arith.addf %225, %226 : vector<2x32xf32>
    %228 = arith.negf %227 : vector<2x32xf32>
    %229 = math.exp %228 : vector<2x32xf32>
    %cst_49 = arith.constant 1.000000e+00 : f32
    %230 = vector.broadcast %cst_49 : f32 to vector<2x32xf32>
    %231 = arith.addf %230, %229 : vector<2x32xf32>
    %232 = arith.divf %230, %231 : vector<2x32xf32>
    %233 = vector.extract_strided_slice %221 {offsets = [0, 32], sizes = [2, 32], strides = [1, 1]} : vector<2x96xf32> to vector<2x32xf32>
    %234 = vector.extract_strided_slice %224 {offsets = [0, 32], sizes = [2, 32], strides = [1, 1]} : vector<2x96xf32> to vector<2x32xf32>
    %235 = arith.addf %233, %234 : vector<2x32xf32>
    %236 = arith.negf %235 : vector<2x32xf32>
    %237 = math.exp %236 : vector<2x32xf32>
    %cst_50 = arith.constant 1.000000e+00 : f32
    %238 = vector.broadcast %cst_50 : f32 to vector<2x32xf32>
    %239 = arith.addf %238, %237 : vector<2x32xf32>
    %240 = arith.divf %238, %239 : vector<2x32xf32>
    %241 = vector.extract_strided_slice %221 {offsets = [0, 64], sizes = [2, 32], strides = [1, 1]} : vector<2x96xf32> to vector<2x32xf32>
    %242 = vector.extract_strided_slice %224 {offsets = [0, 64], sizes = [2, 32], strides = [1, 1]} : vector<2x96xf32> to vector<2x32xf32>
    %243 = arith.mulf %232, %242 : vector<2x32xf32>
    %244 = arith.addf %241, %243 : vector<2x32xf32>
    %245 = math.tanh %244 : vector<2x32xf32>
    %cst_51 = arith.constant 1.000000e+00 : f32
    %246 = vector.broadcast %cst_51 : f32 to vector<2x32xf32>
    %247 = arith.subf %246, %240 : vector<2x32xf32>
    %248 = arith.mulf %247, %245 : vector<2x32xf32>
    %249 = arith.mulf %240, %219 : vector<2x32xf32>
    %250 = arith.addf %248, %249 : vector<2x32xf32>
    %c0_52 = arith.constant 0 : index
    %c0_53 = arith.constant 0 : index
    %251 = vector.load %arg3[%c0_52, %c0_53] : memref<2x32xf32, #tpu.memory_space<vmem>>, vector<2x32xf32>
    tpu.vector_store %arg3[%c0_52, %c0_53], %250 {strides = array<i32>} : memref<2x32xf32, #tpu.memory_space<vmem>>, vector<2x32xf32>,
    return
  }
}

module attributes {stable_mosaic.version = 11 : i64} {
  func.func @fused_recurrence_kernel(%arg0: i32, %arg1: i32, %arg2: memref<1x8x72xf32, #tpu.memory_space<vmem>>, %arg3: memref<32x128xf32, #tpu.memory_space<vmem>>, %arg4: memref<32x128xf32, #tpu.memory_space<vmem>>, %arg5: memref<1x128xf32, #tpu.memory_space<vmem>>, %arg6: memref<1x128xf32, #tpu.memory_space<vmem>>, %arg7: memref<32x64xf32, #tpu.memory_space<vmem>>, %arg8: memref<32x64xf32, #tpu.memory_space<vmem>>, %arg9: memref<1x64xf32, #tpu.memory_space<vmem>>, %arg10: memref<64x128xf32, #tpu.memory_space<vmem>>, %arg11: memref<1x128xf32, #tpu.memory_space<vmem>>, %arg12: memref<8x128xf32, #tpu.memory_space<vmem>>, %arg13: memref<8x32xf32, #tpu.memory_space<vmem>>, %arg14: memref<8x32xf32, #tpu.memory_space<vmem>>) attributes {dimension_semantics = [#tpu.dimension_semantics<parallel>, #tpu.dimension_semantics<arbitrary>], iteration_bounds = array<i64: 2, 2>, scalar_prefetch = 0 : i64, scratch_operands = 2 : i64, tpu.core_type = #tpu.core_type<tc>, window_params = [{transform_indices = @transform_0, window_bounds = array<i64: 1, 8, 72>}, {pipeline_mode = #tpu.pipeline_mode<synchronous>, transform_indices = @transform_1, window_bounds = array<i64: 32, 128>}, {pipeline_mode = #tpu.pipeline_mode<synchronous>, transform_indices = @transform_2, window_bounds = array<i64: 32, 128>}, {pipeline_mode = #tpu.pipeline_mode<synchronous>, transform_indices = @transform_3, window_bounds = array<i64: 1, 128>}, {pipeline_mode = #tpu.pipeline_mode<synchronous>, transform_indices = @transform_4, window_bounds = array<i64: 1, 128>}, {pipeline_mode = #tpu.pipeline_mode<synchronous>, transform_indices = @transform_5, window_bounds = array<i64: 32, 64>}, {pipeline_mode = #tpu.pipeline_mode<synchronous>, transform_indices = @transform_6, window_bounds = array<i64: 32, 64>}, {pipeline_mode = #tpu.pipeline_mode<synchronous>, transform_indices = @transform_7, window_bounds = array<i64: 1, 64>}, {pipeline_mode = #tpu.pipeline_mode<synchronous>, transform_indices = @transform_8, window_bounds = array<i64: 64, 128>}, {pipeline_mode = #tpu.pipeline_mode<synchronous>, transform_indices = @transform_9, window_bounds = array<i64: 1, 128>}, {transform_indices = @transform_10, window_bounds = array<i64: 8, 128>}]} {
    %c0_i32 = arith.constant 0 : i32
    %0 = arith.cmpi eq, %arg1, %c0_i32 : i32
    %1 = arith.extui %0 : i1 to i32
    %c0_i32_0 = arith.constant 0 : i32
    %2 = arith.cmpi ne, %1, %c0_i32_0 : i32
    scf.if %2 {
      %cst_53 = arith.constant 0.000000e+00 : f32
      %126 = vector.broadcast %cst_53 : f32 to vector<8x32xf32>
      %c0_54 = arith.constant 0 : index
      %c0_55 = arith.constant 0 : index
      %127 = vector.load %arg13[%c0_54, %c0_55] : memref<8x32xf32, #tpu.memory_space<vmem>>, vector<8x32xf32>
      tpu.vector_store %arg13[%c0_54, %c0_55], %126 {strides = array<i32>} : memref<8x32xf32, #tpu.memory_space<vmem>>, vector<8x32xf32>,
      %cst_56 = arith.constant 0.000000e+00 : f32
      %128 = vector.broadcast %cst_56 : f32 to vector<8x32xf32>
      %c0_57 = arith.constant 0 : index
      %c0_58 = arith.constant 0 : index
      %129 = vector.load %arg14[%c0_57, %c0_58] : memref<8x32xf32, #tpu.memory_space<vmem>>, vector<8x32xf32>
      tpu.vector_store %arg14[%c0_57, %c0_58], %128 {strides = array<i32>} : memref<8x32xf32, #tpu.memory_space<vmem>>, vector<8x32xf32>,
      %cst_59 = arith.constant 0.000000e+00 : f32
      %130 = vector.broadcast %cst_59 : f32 to vector<8x128xf32>
      %c0_60 = arith.constant 0 : index
      %c0_61 = arith.constant 0 : index
      %131 = vector.load %arg12[%c0_60, %c0_61] : memref<8x128xf32, #tpu.memory_space<vmem>>, vector<8x128xf32>
      tpu.vector_store %arg12[%c0_60, %c0_61], %130 {strides = array<i32>} : memref<8x128xf32, #tpu.memory_space<vmem>>, vector<8x128xf32>,
    } else {
    }
    %c0 = arith.constant 0 : index
    %c0_1 = arith.constant 0 : index
    %c0_2 = arith.constant 0 : index
    %3 = vector.load %arg2[%c0, %c0_1, %c0_2] : memref<1x8x72xf32, #tpu.memory_space<vmem>>, vector<1x8x72xf32>
    %4 = vector.shape_cast %3 : vector<1x8x72xf32> to vector<8x72xf32>
    %5 = vector.extract_strided_slice %4 {offsets = [0, 0], sizes = [8, 32], strides = [1, 1]} : vector<8x72xf32> to vector<8x32xf32>
    %6 = vector.extract_strided_slice %4 {offsets = [0, 32], sizes = [8, 32], strides = [1, 1]} : vector<8x72xf32> to vector<8x32xf32>
    %7 = vector.extract_strided_slice %4 {offsets = [0, 64], sizes = [8, 7], strides = [1, 1]} : vector<8x72xf32> to vector<8x7xf32>
    %8 = vector.extract_strided_slice %4 {offsets = [0, 71], sizes = [8, 1], strides = [1, 1]} : vector<8x72xf32> to vector<8x1xf32>
    %c0_3 = arith.constant 0 : index
    %c0_4 = arith.constant 0 : index
    %9 = vector.load %arg13[%c0_3, %c0_4] : memref<8x32xf32, #tpu.memory_space<vmem>>, vector<8x32xf32>
    %10 = vector.broadcast %8 : vector<8x1xf32> to vector<8x32xf32>
    %11 = arith.mulf %9, %10 : vector<8x32xf32>
    %c0_5 = arith.constant 0 : index
    %c0_6 = arith.constant 0 : index
    %12 = vector.load %arg14[%c0_5, %c0_6] : memref<8x32xf32, #tpu.memory_space<vmem>>, vector<8x32xf32>
    %13 = vector.broadcast %8 : vector<8x1xf32> to vector<8x32xf32>
    %14 = arith.mulf %12, %13 : vector<8x32xf32>
    %c0_7 = arith.constant 0 : index
    %c0_8 = arith.constant 0 : index
    %15 = vector.load %arg3[%c0_7, %c0_8] : memref<32x128xf32, #tpu.memory_space<vmem>>, vector<32x128xf32>
    %cst = arith.constant dense<0.000000e+00> : vector<8x128xf32>
    %16 = tpu.matmul %5, %15, %cst {dimension_numbers = #tpu.dot_dimension_numbers<[1], [0], [0], [1], [0, 0, 1, 1], [], []>} : vector<8x32xf32>, vector<32x128xf32>, vector<8x128xf32> -> vector<8x128xf32>
    %c0_9 = arith.constant 0 : index
    %c0_10 = arith.constant 0 : index
    %17 = vector.load %arg5[%c0_9, %c0_10] : memref<1x128xf32, #tpu.memory_space<vmem>>, vector<1x128xf32>
    %18 = vector.broadcast %17 : vector<1x128xf32> to vector<8x128xf32>
    %19 = arith.addf %16, %18 : vector<8x128xf32>
    %c0_11 = arith.constant 0 : index
    %c0_12 = arith.constant 0 : index
    %20 = vector.load %arg4[%c0_11, %c0_12] : memref<32x128xf32, #tpu.memory_space<vmem>>, vector<32x128xf32>
    %cst_13 = arith.constant dense<0.000000e+00> : vector<8x128xf32>
    %21 = tpu.matmul %11, %20, %cst_13 {dimension_numbers = #tpu.dot_dimension_numbers<[1], [0], [0], [1], [0, 0, 1, 1], [], []>} : vector<8x32xf32>, vector<32x128xf32>, vector<8x128xf32> -> vector<8x128xf32>
    %22 = arith.addf %19, %21 : vector<8x128xf32>
    %c0_14 = arith.constant 0 : index
    %c0_15 = arith.constant 0 : index
    %23 = vector.load %arg6[%c0_14, %c0_15] : memref<1x128xf32, #tpu.memory_space<vmem>>, vector<1x128xf32>
    %24 = vector.broadcast %23 : vector<1x128xf32> to vector<8x128xf32>
    %25 = arith.addf %22, %24 : vector<8x128xf32>
    %26 = vector.extract_strided_slice %25 {offsets = [0, 0], sizes = [8, 96], strides = [1, 1]} : vector<8x128xf32> to vector<8x96xf32>
    %27 = arith.negf %26 : vector<8x96xf32>
    %28 = math.exp %27 : vector<8x96xf32>
    %cst_16 = arith.constant 1.000000e+00 : f32
    %29 = vector.broadcast %cst_16 : f32 to vector<8x96xf32>
    %30 = arith.addf %29, %28 : vector<8x96xf32>
    %31 = arith.divf %29, %30 : vector<8x96xf32>
    %32 = vector.extract_strided_slice %31 {offsets = [0, 0], sizes = [8, 32], strides = [1, 1]} : vector<8x96xf32> to vector<8x32xf32>
    %33 = vector.extract_strided_slice %31 {offsets = [0, 32], sizes = [8, 32], strides = [1, 1]} : vector<8x96xf32> to vector<8x32xf32>
    %34 = vector.extract_strided_slice %31 {offsets = [0, 64], sizes = [8, 32], strides = [1, 1]} : vector<8x96xf32> to vector<8x32xf32>
    %35 = vector.extract_strided_slice %25 {offsets = [0, 96], sizes = [8, 32], strides = [1, 1]} : vector<8x128xf32> to vector<8x32xf32>
    %36 = math.tanh %35 : vector<8x32xf32>
    %37 = arith.mulf %33, %14 : vector<8x32xf32>
    %38 = arith.mulf %32, %36 : vector<8x32xf32>
    %39 = arith.addf %37, %38 : vector<8x32xf32>
    %40 = math.tanh %39 : vector<8x32xf32>
    %41 = arith.mulf %34, %40 : vector<8x32xf32>
    %c0_17 = arith.constant 0 : index
    %c0_18 = arith.constant 0 : index
    %42 = vector.load %arg13[%c0_17, %c0_18] : memref<8x32xf32, #tpu.memory_space<vmem>>, vector<8x32xf32>
    tpu.vector_store %arg13[%c0_17, %c0_18], %41 {strides = array<i32>} : memref<8x32xf32, #tpu.memory_space<vmem>>, vector<8x32xf32>,
    %c0_19 = arith.constant 0 : index
    %c0_20 = arith.constant 0 : index
    %43 = vector.load %arg14[%c0_19, %c0_20] : memref<8x32xf32, #tpu.memory_space<vmem>>, vector<8x32xf32>
    tpu.vector_store %arg14[%c0_19, %c0_20], %39 {strides = array<i32>} : memref<8x32xf32, #tpu.memory_space<vmem>>, vector<8x32xf32>,
    %c0_21 = arith.constant 0 : index
    %c0_22 = arith.constant 0 : index
    %44 = vector.load %arg7[%c0_21, %c0_22] : memref<32x64xf32, #tpu.memory_space<vmem>>, vector<32x64xf32>
    %cst_23 = arith.constant dense<0.000000e+00> : vector<8x64xf32>
    %45 = tpu.matmul %41, %44, %cst_23 {dimension_numbers = #tpu.dot_dimension_numbers<[1], [0], [0], [1], [0, 0, 1, 1], [], []>} : vector<8x32xf32>, vector<32x64xf32>, vector<8x64xf32> -> vector<8x64xf32>
    %c0_24 = arith.constant 0 : index
    %c0_25 = arith.constant 0 : index
    %46 = vector.load %arg8[%c0_24, %c0_25] : memref<32x64xf32, #tpu.memory_space<vmem>>, vector<32x64xf32>
    %cst_26 = arith.constant dense<0.000000e+00> : vector<8x64xf32>
    %47 = tpu.matmul %6, %46, %cst_26 {dimension_numbers = #tpu.dot_dimension_numbers<[1], [0], [0], [1], [0, 0, 1, 1], [], []>} : vector<8x32xf32>, vector<32x64xf32>, vector<8x64xf32> -> vector<8x64xf32>
    %48 = arith.addf %45, %47 : vector<8x64xf32>
    %c0_27 = arith.constant 0 : index
    %c0_28 = arith.constant 0 : index
    %49 = vector.load %arg9[%c0_27, %c0_28] : memref<1x64xf32, #tpu.memory_space<vmem>>, vector<1x64xf32>
    %50 = vector.broadcast %49 : vector<1x64xf32> to vector<8x64xf32>
    %51 = arith.addf %48, %50 : vector<8x64xf32>
    %52 = math.tanh %51 : vector<8x64xf32>
    %c0_29 = arith.constant 0 : index
    %c0_30 = arith.constant 0 : index
    %53 = vector.load %arg10[%c0_29, %c0_30] : memref<64x128xf32, #tpu.memory_space<vmem>>, vector<64x128xf32>
    %cst_31 = arith.constant dense<0.000000e+00> : vector<8x128xf32>
    %54 = tpu.matmul %52, %53, %cst_31 {dimension_numbers = #tpu.dot_dimension_numbers<[1], [0], [0], [1], [0, 0, 1, 1], [], []>} : vector<8x64xf32>, vector<64x128xf32>, vector<8x128xf32> -> vector<8x128xf32>
    %c0_32 = arith.constant 0 : index
    %c0_33 = arith.constant 0 : index
    %55 = vector.load %arg11[%c0_32, %c0_33] : memref<1x128xf32, #tpu.memory_space<vmem>>, vector<1x128xf32>
    %56 = vector.broadcast %55 : vector<1x128xf32> to vector<8x128xf32>
    %57 = arith.addf %54, %56 : vector<8x128xf32>
    %cst_34 = arith.constant dense<0xFF800000> : vector<8xf32>
    %58 = vector.multi_reduction <maximumf>, %57, %cst_34 [1] : vector<8x128xf32> to vector<8xf32>
    %59 = vector.shape_cast %58 : vector<8xf32> to vector<8x1xf32>
    %60 = vector.broadcast %59 : vector<8x1xf32> to vector<8x128xf32>
    %61 = arith.subf %57, %60 : vector<8x128xf32>
    %62 = math.exp %61 : vector<8x128xf32>
    %cst_35 = arith.constant dense<0.000000e+00> : vector<8xf32>
    %63 = vector.multi_reduction <add>, %62, %cst_35 [1] : vector<8x128xf32> to vector<8xf32>
    %64 = vector.shape_cast %63 : vector<8xf32> to vector<8x1xf32>
    %65 = math.log %64 : vector<8x1xf32>
    %66 = vector.broadcast %65 : vector<8x1xf32> to vector<8x128xf32>
    %67 = arith.subf %61, %66 : vector<8x128xf32>
    %68 = vector.broadcast %64 : vector<8x1xf32> to vector<8x128xf32>
    %69 = arith.divf %62, %68 : vector<8x128xf32>
    %70 = arith.mulf %69, %67 : vector<8x128xf32>
    %cst_36 = arith.constant dense<0.000000e+00> : vector<8xf32>
    %71 = vector.multi_reduction <add>, %70, %cst_36 [1] : vector<8x128xf32> to vector<8xf32>
    %72 = vector.shape_cast %71 : vector<8xf32> to vector<8x1xf32>
    %cst_37 = arith.constant 0.000000e+00 : f32
    %73 = vector.broadcast %cst_37 : f32 to vector<8x1xf32>
    %74 = arith.subf %73, %72 : vector<8x1xf32>
    %75 = vector.extract_strided_slice %67 {offsets = [0, 0], sizes = [8, 7], strides = [1, 1]} : vector<8x128xf32> to vector<8x7xf32>
    %76 = arith.mulf %7, %75 : vector<8x7xf32>
    %cst_38 = arith.constant dense<0.000000e+00> : vector<8xf32>
    %77 = vector.multi_reduction <add>, %76, %cst_38 [1] : vector<8x7xf32> to vector<8xf32>
    %78 = vector.shape_cast %77 : vector<8xf32> to vector<8x1xf32>
    %cst_39 = arith.constant 0.000000e+00 : f32
    %79 = vector.broadcast %cst_39 : f32 to vector<8x1xf32>
    %80 = arith.subf %79, %78 : vector<8x1xf32>
    %81 = vector.extract_strided_slice %57 {offsets = [0, 0], sizes = [8, 7], strides = [1, 1]} : vector<8x128xf32> to vector<8x7xf32>
    %82 = vector.broadcast %59 : vector<8x1xf32> to vector<8x7xf32>
    %83 = arith.cmpf oge, %81, %82 : vector<8x7xf32>
    %84 = arith.extui %83 : vector<8x7xi1> to vector<8x7xi32>
    %85 = arith.sitofp %84 : vector<8x7xi32> to vector<8x7xf32>
    %86 = arith.mulf %7, %85 : vector<8x7xf32>
    %cst_40 = arith.constant dense<0.000000e+00> : vector<8xf32>
    %87 = vector.multi_reduction <add>, %86, %cst_40 [1] : vector<8x7xf32> to vector<8xf32>
    %88 = vector.shape_cast %87 : vector<8xf32> to vector<8x1xf32>
    %cst_41 = arith.constant 0.000000e+00 : f32
    %89 = vector.broadcast %cst_41 : f32 to vector<8x1xf32>
    %90 = arith.cmpf ogt, %88, %89 : vector<8x1xf32>
    %91 = arith.extui %90 : vector<8x1xi1> to vector<8x1xi32>
    %92 = arith.sitofp %91 : vector<8x1xi32> to vector<8x1xf32>
    %93 = tpu.iota {dimensions = array<i32: 1>} : vector<8x128xi32>
    %c0_i32_42 = arith.constant 0 : i32
    %94 = vector.broadcast %c0_i32_42 : i32 to vector<8x128xi32>
    %95 = arith.cmpi eq, %93, %94 : vector<8x128xi32>
    %cst_43 = arith.constant 0.000000e+00 : f32
    %96 = vector.shape_cast %74 : vector<8x1xf32> to vector<8x1xf32>
    %97 = vector.broadcast %96 : vector<8x1xf32> to vector<8x128xf32>
    %98 = vector.broadcast %cst_43 : f32 to vector<8x128xf32>
    %99 = arith.select %95, %97, %98 : vector<8x128xi1>, vector<8x128xf32>
    %c1_i32 = arith.constant 1 : i32
    %100 = vector.broadcast %c1_i32 : i32 to vector<8x128xi32>
    %101 = arith.cmpi eq, %93, %100 : vector<8x128xi32>
    %cst_44 = arith.constant 0.000000e+00 : f32
    %102 = vector.shape_cast %80 : vector<8x1xf32> to vector<8x1xf32>
    %103 = vector.broadcast %102 : vector<8x1xf32> to vector<8x128xf32>
    %104 = vector.broadcast %cst_44 : f32 to vector<8x128xf32>
    %105 = arith.select %101, %103, %104 : vector<8x128xi1>, vector<8x128xf32>
    %106 = arith.addf %99, %105 : vector<8x128xf32>
    %c2_i32 = arith.constant 2 : i32
    %107 = vector.broadcast %c2_i32 : i32 to vector<8x128xi32>
    %108 = arith.cmpi eq, %93, %107 : vector<8x128xi32>
    %cst_45 = arith.constant 0.000000e+00 : f32
    %109 = vector.shape_cast %92 : vector<8x1xf32> to vector<8x1xf32>
    %110 = vector.broadcast %109 : vector<8x1xf32> to vector<8x128xf32>
    %111 = vector.broadcast %cst_45 : f32 to vector<8x128xf32>
    %112 = arith.select %108, %110, %111 : vector<8x128xi1>, vector<8x128xf32>
    %113 = arith.addf %106, %112 : vector<8x128xf32>
    %cst_46 = arith.constant dense<0.000000e+00> : vector<128xf32>
    %114 = vector.multi_reduction <add>, %113, %cst_46 [0] : vector<8x128xf32> to vector<128xf32>
    %115 = vector.shape_cast %114 : vector<128xf32> to vector<1x128xf32>
    %116 = tpu.iota {dimensions = array<i32: 0>} : vector<8x128xi32>
    %c0_47 = arith.constant 0 : index
    %c0_48 = arith.constant 0 : index
    %117 = vector.load %arg12[%c0_47, %c0_48] : memref<8x128xf32, #tpu.memory_space<vmem>>, vector<8x128xf32>
    %c0_i32_49 = arith.constant 0 : i32
    %118 = vector.broadcast %c0_i32_49 : i32 to vector<8x128xi32>
    %119 = arith.cmpi eq, %116, %118 : vector<8x128xi32>
    %cst_50 = arith.constant 0.000000e+00 : f32
    %120 = vector.shape_cast %115 : vector<1x128xf32> to vector<1x128xf32>
    %121 = vector.broadcast %120 : vector<1x128xf32> to vector<8x128xf32>
    %122 = vector.broadcast %cst_50 : f32 to vector<8x128xf32>
    %123 = arith.select %119, %121, %122 : vector<8x128xi1>, vector<8x128xf32>
    %124 = arith.addf %117, %123 : vector<8x128xf32>
    %c0_51 = arith.constant 0 : index
    %c0_52 = arith.constant 0 : index
    %125 = vector.load %arg12[%c0_51, %c0_52] : memref<8x128xf32, #tpu.memory_space<vmem>>, vector<8x128xf32>
    tpu.vector_store %arg12[%c0_51, %c0_52], %124 {strides = array<i32>} : memref<8x128xf32, #tpu.memory_space<vmem>>, vector<8x128xf32>,
    return
  }
  func.func @transform_0(%arg0: i32, %arg1: i32) -> (i32, i32, i32) {
    %c0_i32 = arith.constant 0 : i32
    %c0_i32_0 = arith.constant 0 : i32
    return %arg1, %arg0, %c0_i32 : i32, i32, i32
  }
  func.func @transform_1(%arg0: i32, %arg1: i32) -> (i32, i32) {
    %c0_i32 = arith.constant 0 : i32
    %c0_i32_0 = arith.constant 0 : i32
    %c0_i32_1 = arith.constant 0 : i32
    return %c0_i32, %c0_i32_0 : i32, i32
  }
  func.func @transform_2(%arg0: i32, %arg1: i32) -> (i32, i32) {
    %c0_i32 = arith.constant 0 : i32
    %c0_i32_0 = arith.constant 0 : i32
    %c0_i32_1 = arith.constant 0 : i32
    return %c0_i32, %c0_i32_0 : i32, i32
  }
  func.func @transform_3(%arg0: i32, %arg1: i32) -> (i32, i32) {
    %c0_i32 = arith.constant 0 : i32
    %c0_i32_0 = arith.constant 0 : i32
    %c0_i32_1 = arith.constant 0 : i32
    return %c0_i32, %c0_i32_0 : i32, i32
  }
  func.func @transform_4(%arg0: i32, %arg1: i32) -> (i32, i32) {
    %c0_i32 = arith.constant 0 : i32
    %c0_i32_0 = arith.constant 0 : i32
    %c0_i32_1 = arith.constant 0 : i32
    return %c0_i32, %c0_i32_0 : i32, i32
  }
  func.func @transform_5(%arg0: i32, %arg1: i32) -> (i32, i32) {
    %c0_i32 = arith.constant 0 : i32
    %c0_i32_0 = arith.constant 0 : i32
    %c0_i32_1 = arith.constant 0 : i32
    return %c0_i32, %c0_i32_0 : i32, i32
  }
  func.func @transform_6(%arg0: i32, %arg1: i32) -> (i32, i32) {
    %c0_i32 = arith.constant 0 : i32
    %c0_i32_0 = arith.constant 0 : i32
    %c0_i32_1 = arith.constant 0 : i32
    return %c0_i32, %c0_i32_0 : i32, i32
  }
  func.func @transform_7(%arg0: i32, %arg1: i32) -> (i32, i32) {
    %c0_i32 = arith.constant 0 : i32
    %c0_i32_0 = arith.constant 0 : i32
    %c0_i32_1 = arith.constant 0 : i32
    return %c0_i32, %c0_i32_0 : i32, i32
  }
  func.func @transform_8(%arg0: i32, %arg1: i32) -> (i32, i32) {
    %c0_i32 = arith.constant 0 : i32
    %c0_i32_0 = arith.constant 0 : i32
    %c0_i32_1 = arith.constant 0 : i32
    return %c0_i32, %c0_i32_0 : i32, i32
  }
  func.func @transform_9(%arg0: i32, %arg1: i32) -> (i32, i32) {
    %c0_i32 = arith.constant 0 : i32
    %c0_i32_0 = arith.constant 0 : i32
    %c0_i32_1 = arith.constant 0 : i32
    return %c0_i32, %c0_i32_0 : i32, i32
  }
  func.func @transform_10(%arg0: i32, %arg1: i32) -> (i32, i32) {
    %c0_i32 = arith.constant 0 : i32
    %c0_i32_0 = arith.constant 0 : i32
    return %arg0, %c0_i32 : i32, i32
  }
}

</mosaic_0001>

<bundles_post_ra>
// kernel: _forward_batch_impl.4
= control target key start
LH: loop header
LB: loop body
LE: loop exit
PB: predicated region body
PF: predicated region fallthrough
CT: control target
= control target key end

     0   :  { %v1060_v0 = vmov 0.0   ;;  %vm1061_vm0 = vmmov 0   ;;  %s1062_s21 = smov 64   ;;  %vm26_vm1 = vcmask 261120   ;;  %vm851_vm2 = vcmask 254976   ;;  %s1264_s1 = inlined_call_operand.vmem [shape: f32[32,96], index: 1, kind: input, shape index: {}]   ;;  %s1265_s2 = inlined_call_operand.vmem [shape: f32[1,96], index: 2, kind: input, shape index: {}]   ;;  %s1266_s0 = inlined_call_operand.vmem [shape: f32[8,2,96], index: 0, kind: input, shape index: {}]   ;;  %s1267_s3 = inlined_call_operand.vmem [shape: f32[2,32], index: 3, kind: output, shape index: {}]  }
   0x1   :  { %920 = vmatprep.subr.mxu0 %v1060_v0  ;;  %v1088_v1 = vld [vmem:[%s1264_s1 + $0x18] sm:$0xff]  ;;  %v1093_v2 = vld [vmem:[%s1264_s1 + $0x10] sm:$0xff]  ;;  %928 = vmatprep.mubr.msk.f32.mxu0 %vm1061_vm0, %v1060_v0  ;;  %v1103_v3 = vld [vmem:[%s1264_s1 + $0x8] sm:$0xff] }
   0x2   :  { %921 = vmatpush3.msra.mxu0 %v1088_v1  ;;  %931 = vmatprep.subr.mxu1 %v1060_v0  ;;  %v1112_v4 = vld [vmem:[%s1264_s1] sm:$0xff] }
   0x3   :  { %922 = vmatprep.subr.mxu0 %v1060_v0  ;;  %932 = vmatpush3.msra.mxu1 %v1088_v1  ;;  %v1140_v5 = vld [vmem:[%s1265_s2] ss:$0 sm:$0xff]  ;;  %s1063_s2 = smov 96   ;;  %v859_v29 = vld [vmem:[%s1266_s0 + $0x2] sm:$0x3] }
   0x4   :  { %923 = vmatpush3.msra.mxu0 %v1093_v2  ;;  %933 = vmatprep.subr.mxu1 %v1060_v0  ;;  %v19_v9 = vld [vmem:[%s1266_s0] sm:$0x3]  ;;  %v862_v49 = vld [vmem:[%s1266_s0 + $0x4] sm:$0x3] }
   0x5   :  { %924 = vmatprep.subr.mxu0 %v1060_v0  ;;  %934 = vmatpush3.msra.mxu1 %v1093_v2 }
   0x6   :  { %925 = vmatpush3.msra.mxu0 %v1103_v3  ;;  %935 = vmatprep.subr.mxu1 %v1060_v0 }
   0x7   :  { %926 = vmatprep.subr.mxu0 %v1060_v0  ;;  %936 = vmatpush3.msra.mxu1 %v1103_v3 }
   0x8   :  { %927 = vmatpush3.msra.mxu0 %v1112_v4  ;;  %937 = vmatprep.subr.mxu1 %v1060_v0 }
   0x9   :  { %929 = vmatmul.mubr.f32.vlgmr.msra.gmra.mxu0 %v1060_v0  ;;  %938 = vmatpush3.msra.mxu1 %v1112_v4 }
   0xa   :  { %939 = vmatprep.mubr.msk.f32.mxu1 %vm1061_vm0, %v1060_v0  ;;  %942 = vmatprep.subr.mxu0 %v1060_v0 }
   0xb   :  { %943 = vmatpush3.msra.mxu0 %v1088_v1  ;;  %950 = vmatprep.mubr.msk.f32.mxu0 %vm1061_vm0, %v1060_v0 }
   0xc   :  { %944 = vmatprep.subr.mxu0 %v1060_v0  ;;  %953 = vmatprep.subr.mxu1 %v1060_v0 }
   0xd   :  { %945 = vmatpush3.msra.mxu0 %v1093_v2 }
   0xe   :  { %946 = vmatprep.subr.mxu0 %v1060_v0 }
   0xf   :  { %947 = vmatpush3.msra.mxu0 %v1103_v3 }
  0x10   :  { %948 = vmatprep.subr.mxu0 %v1060_v0 }
  0x11   :  { %949 = vmatpush3.msra.mxu0 %v1112_v4 }
  0x12   :  { %964 = vmatprep.subr.mxu0 %v1060_v0 }
  0xc9   :  { %v96_v6 = vpop.f32.mrf.mxu0 }
  0xca   :  { %v97_v7 = vadd.f32 %v1140_v5, %v96_v6 }
  0xcb   :  { %v930_v8 = vpop.f32.mrf.mxu0 }
  0xcc   :  { %108 = vrot.lane.b32.xlu0 %v97_v7, %s1062_s21  ;;  %v100_v10 = vadd.f32 %v97_v7, %v19_v9 }
  0xce   :  { %v858_v11 = vmul.f32 -1.442695, %v100_v10 }
  0xd0   :  { %1012 = vpow2.f32 %v858_v11  ;;  %v865_v11 = vld [vmem:[%s1266_s0 + $0x6] sm:$0x3] }
  0xdd   :  { %v1013_v12 = vpop.eup %1012 }
  0xde   :  { %v104_v13 = vadd.f32 1.0, %v1013_v12 }
  0xe0   :  { %1014 = vrcp.f32 %v104_v13 }
  0xed   :  { %v1015_v14 = vpop.eup %1014 }
  0xee   :  { %v118_v20 = vsub.f32 1.0, %v1015_v14  ;;  %v124_v22 = vmul.f32 0.0, %v1015_v14 }
 0x13e   :  { %v109_v15 = vpop.permute.xlu0 %108 }
 0x13f   :  { %v111_v16 = vmul.f32 %v1015_v14, %v109_v15 }
 0x141   :  { %113 = vrot.lane.b32.xlu0 %v111_v16, %s1062_s21 }
 0x1b3   :  { %v114_v17 = vpop.permute.xlu0 %113 }
 0x1b4   :  { %v116_v18 = vadd.f32 %v114_v17, %v19_v9 }
 0x1b6   :  { %1016 = vtanh.f32 %v116_v18 }
 0x1c3   :  { %v1017_v19 = vpop.eup %1016 }
 0x1c4   :  { %120 = vrot.lane.b32.xlu1 %v1017_v19, %s1063_s2 }
 0x236   :  { %v121_v21 = vpop.permute.xlu1 %120 }
 0x237   :  { %v123_v23 = vmul.f32 %v121_v21, %v118_v20 }
 0x239   :  { %v125_v24 = vadd.f32 %v124_v22, %v123_v23 }
 0x23b   :  { %129 = vrot.lane.b32.xlu1 %v125_v24, %s1063_s2 }
 0x2ad   :  { %v130_v25 = vpop.permute.xlu1 %129 }
 0x2ae   :  { %940 = vmatmul.mubr.msk.f32.vlgmr.msra.gmra.mxu1 %vm26_vm1, %v130_v25 }
 0x2af   :  { %954 = vmatpush3.msra.mxu1 %v1088_v1  ;;  %961 = vmatprep.mubr.msk.f32.mxu1 %vm1061_vm0, %v1060_v0 }
 0x2b0   :  { %955 = vmatprep.subr.mxu1 %v1060_v0 }
 0x2b1   :  { %956 = vmatpush3.msra.mxu1 %v1093_v2 }
 0x2b2   :  { %957 = vmatprep.subr.mxu1 %v1060_v0 }
 0x2b3   :  { %958 = vmatpush3.msra.mxu1 %v1103_v3 }
 0x2b4   :  { %959 = vmatprep.subr.mxu1 %v1060_v0 }
 0x2b5   :  { %960 = vmatpush3.msra.mxu1 %v1112_v4 }
 0x2b6   :  { %975 = vmatprep.subr.mxu1 %v1060_v0 }
 0x36e   :  { %v199_v26 = vpop.f32.mrf.mxu1 }
 0x36f   :  { %v200_v27 = vadd.f32 %v1140_v5, %v199_v26 }
 0x370   :  { %v941_v28 = vpop.f32.mrf.mxu1 }
 0x371   :  { %211 = vrot.lane.b32.xlu0 %v200_v27, %s1062_s21  ;;  %v203_v30 = vadd.f32 %v859_v29, %v200_v27 }
 0x373   :  { %v861_v31 = vmul.f32 -1.442695, %v203_v30 }
 0x375   :  { %1018 = vpow2.f32 %v861_v31  ;;  %v868_v31 = vld [vmem:[%s1266_s0 + $0x8] sm:$0x3] }
 0x382   :  { %v1019_v32 = vpop.eup %1018 }
 0x383   :  { %v207_v33 = vadd.f32 1.0, %v1019_v32 }
 0x385   :  { %1020 = vrcp.f32 %v207_v33 }
 0x392   :  { %v1021_v34 = vpop.eup %1020 }
 0x393   :  { %v221_v40 = vsub.f32 1.0, %v1021_v34  ;;  %v227_v42 = vmul.f32 %v1021_v34, %v125_v24 }
 0x3e3   :  { %v212_v35 = vpop.permute.xlu0 %211 }
 0x3e4   :  { %v214_v36 = vmul.f32 %v1021_v34, %v212_v35 }
 0x3e6   :  { %216 = vrot.lane.b32.xlu1 %v214_v36, %s1062_s21 }
 0x458   :  { %v217_v37 = vpop.permute.xlu1 %216 }
 0x459   :  { %v219_v38 = vadd.f32 %v859_v29, %v217_v37 }
 0x45b   :  { %1022 = vtanh.f32 %v219_v38 }
 0x468   :  { %v1023_v39 = vpop.eup %1022 }
 0x469   :  { %223 = vrot.lane.b32.xlu0 %v1023_v39, %s1063_s2 }
 0x4db   :  { %v224_v41 = vpop.permute.xlu0 %223 }
 0x4dc   :  { %v226_v43 = vmul.f32 %v224_v41, %v221_v40 }
 0x4de   :  { %v228_v44 = vadd.f32 %v227_v42, %v226_v43 }
 0x4e0   :  { %232 = vrot.lane.b32.xlu1 %v228_v44, %s1063_s2 }
 0x552   :  { %v233_v45 = vpop.permute.xlu1 %232 }
 0x553   :  { %951 = vmatmul.mubr.msk.f32.vlgmr.msra.gmra.mxu0 %vm26_vm1, %v233_v45 }
 0x554   :  { %965 = vmatpush3.msra.mxu0 %v1088_v1  ;;  %972 = vmatprep.mubr.msk.f32.mxu0 %vm1061_vm0, %v1060_v0 }
 0x555   :  { %966 = vmatprep.subr.mxu0 %v1060_v0 }
 0x556   :  { %967 = vmatpush3.msra.mxu0 %v1093_v2 }
 0x557   :  { %968 = vmatprep.subr.mxu0 %v1060_v0 }
 0x558   :  { %969 = vmatpush3.msra.mxu0 %v1103_v3 }
 0x559   :  { %970 = vmatprep.subr.mxu0 %v1060_v0 }
 0x55a   :  { %971 = vmatpush3.msra.mxu0 %v1112_v4 }
 0x55b   :  { %986 = vmatprep.subr.mxu0 %v1060_v0 }
 0x613   :  { %v302_v46 = vpop.f32.mrf.mxu0 }
 0x614   :  { %v303_v47 = vadd.f32 %v1140_v5, %v302_v46 }
 0x615   :  { %v952_v48 = vpop.f32.mrf.mxu0 }
 0x616   :  { %314 = vrot.lane.b32.xlu0 %v303_v47, %s1062_s21  ;;  %v306_v50 = vadd.f32 %v862_v49, %v303_v47 }
 0x618   :  { %v864_v51 = vmul.f32 -1.442695, %v306_v50 }
 0x61a   :  { %1024 = vpow2.f32 %v864_v51 }
 0x627   :  { %v1025_v52 = vpop.eup %1024 }
 0x628   :  { %v310_v53 = vadd.f32 1.0, %v1025_v52 }
 0x62a   :  { %1026 = vrcp.f32 %v310_v53 }
 0x637   :  { %v1027_v54 = vpop.eup %1026 }
 0x638   :  { %v324_v60 = vsub.f32 1.0, %v1027_v54  ;;  %v330_v62 = vmul.f32 %v1027_v54, %v228_v44 }
 0x688   :  { %v315_v55 = vpop.permute.xlu0 %314 }
 0x689   :  { %v317_v56 = vmul.f32 %v1027_v54, %v315_v55 }
 0x68b   :  { %319 = vrot.lane.b32.xlu1 %v317_v56, %s1062_s21 }
 0x6fd   :  { %v320_v57 = vpop.permute.xlu1 %319 }
 0x6fe   :  { %v322_v58 = vadd.f32 %v862_v49, %v320_v57 }
 0x700   :  { %1028 = vtanh.f32 %v322_v58 }
 0x70d   :  { %v1029_v59 = vpop.eup %1028 }
 0x70e   :  { %326 = vrot.lane.b32.xlu0 %v1029_v59, %s1063_s2 }
 0x780   :  { %v327_v61 = vpop.permute.xlu0 %326 }
 0x781   :  { %v329_v63 = vmul.f32 %v327_v61, %v324_v60 }
 0x783   :  { %v331_v6 = vadd.f32 %v330_v62, %v329_v63 }
 0x785   :  { %335 = vrot.lane.b32.xlu1 %v331_v6, %s1063_s2 }
 0x7f7   :  { %v336_v7 = vpop.permute.xlu1 %335 }
 0x7f8   :  { %962 = vmatmul.mubr.msk.f32.vlgmr.msra.gmra.mxu1 %vm26_vm1, %v336_v7 }
 0x7f9   :  { %976 = vmatpush3.msra.mxu1 %v1088_v1  ;;  %983 = vmatprep.mubr.msk.f32.mxu1 %vm1061_vm0, %v1060_v0 }
 0x7fa   :  { %977 = vmatprep.subr.mxu1 %v1060_v0 }
 0x7fb   :  { %978 = vmatpush3.msra.mxu1 %v1093_v2 }
 0x7fc   :  { %979 = vmatprep.subr.mxu1 %v1060_v0 }
 0x7fd   :  { %980 = vmatpush3.msra.mxu1 %v1103_v3 }
 0x7fe   :  { %981 = vmatprep.subr.mxu1 %v1060_v0 }
 0x7ff   :  { %982 = vmatpush3.msra.mxu1 %v1112_v4 }
 0x800   :  { %997 = vmatprep.subr.mxu1 %v1060_v0 }
 0x8b8   :  { %v405_v8 = vpop.f32.mrf.mxu1 }
 0x8b9   :  { %v406_v9 = vadd.f32 %v1140_v5, %v405_v8  ;;  %v874_v8 = vld [vmem:[%s1266_s0 + $0xc] sm:$0x3] }
 0x8ba   :  { %v963_v10 = vpop.f32.mrf.mxu1 }
 0x8bb   :  { %417 = vrot.lane.b32.xlu0 %v406_v9, %s1062_s21  ;;  %v409_v12 = vadd.f32 %v865_v11, %v406_v9 }
 0x8bd   :  { %v867_v13 = vmul.f32 -1.442695, %v409_v12 }
 0x8bf   :  { %1030 = vpow2.f32 %v867_v13 }
 0x8cc   :  { %v1031_v14 = vpop.eup %1030 }
 0x8cd   :  { %v413_v15 = vadd.f32 1.0, %v1031_v14 }
 0x8cf   :  { %1032 = vrcp.f32 %v413_v15 }
 0x8dc   :  { %v1033_v16 = vpop.eup %1032 }
 0x8dd   :  { %v427_v22 = vsub.f32 1.0, %v1033_v16  ;;  %v433_v24 = vmul.f32 %v1033_v16, %v331_v6 }
 0x92d   :  { %v418_v17 = vpop.permute.xlu0 %417 }
 0x92e   :  { %v420_v18 = vmul.f32 %v1033_v16, %v418_v17 }
 0x930   :  { %422 = vrot.lane.b32.xlu1 %v420_v18, %s1062_s21 }
 0x9a2   :  { %v423_v19 = vpop.permute.xlu1 %422 }
 0x9a3   :  { %v425_v20 = vadd.f32 %v865_v11, %v423_v19 }
 0x9a5   :  { %1034 = vtanh.f32 %v425_v20 }
 0x9b2   :  { %v1035_v21 = vpop.eup %1034 }
 0x9b3   :  { %429 = vrot.lane.b32.xlu0 %v1035_v21, %s1063_s2 }
 0xa25   :  { %v430_v23 = vpop.permute.xlu0 %429 }
 0xa26   :  { %v432_v25 = vmul.f32 %v430_v23, %v427_v22 }
 0xa28   :  { %v434_v26 = vadd.f32 %v433_v24, %v432_v25 }
 0xa2a   :  { %438 = vrot.lane.b32.xlu1 %v434_v26, %s1063_s2 }
 0xa9c   :  { %v439_v27 = vpop.permute.xlu1 %438 }
 0xa9d   :  { %973 = vmatmul.mubr.msk.f32.vlgmr.msra.gmra.mxu0 %vm26_vm1, %v439_v27 }
 0xa9e   :  { %987 = vmatpush3.msra.mxu0 %v1088_v1  ;;  %994 = vmatprep.mubr.msk.f32.mxu0 %vm1061_vm0, %v1060_v0 }
 0xa9f   :  { %988 = vmatprep.subr.mxu0 %v1060_v0 }
 0xaa0   :  { %989 = vmatpush3.msra.mxu0 %v1093_v2 }
 0xaa1   :  { %990 = vmatprep.subr.mxu0 %v1060_v0 }
 0xaa2   :  { %991 = vmatpush3.msra.mxu0 %v1103_v3 }
 0xaa3   :  { %992 = vmatprep.subr.mxu0 %v1060_v0 }
 0xaa4   :  { %993 = vmatpush3.msra.mxu0 %v1112_v4 }
 0xb5d   :  { %v508_v28 = vpop.f32.mrf.mxu0 }
 0xb5e   :  { %v509_v29 = vadd.f32 %v1140_v5, %v508_v28  ;;  %v877_v28 = vld [vmem:[%s1266_s0 + $0xe] sm:$0x3] }
 0xb5f   :  { %v974_v30 = vpop.f32.mrf.mxu0 }
 0xb60   :  { %520 = vrot.lane.b32.xlu0 %v509_v29, %s1062_s21  ;;  %v512_v32 = vadd.f32 %v868_v31, %v509_v29 }
 0xb62   :  { %v870_v33 = vmul.f32 -1.442695, %v512_v32 }
 0xb64   :  { %1036 = vpow2.f32 %v870_v33 }
 0xb71   :  { %v1037_v34 = vpop.eup %1036 }
 0xb72   :  { %v516_v35 = vadd.f32 1.0, %v1037_v34 }
 0xb74   :  { %1038 = vrcp.f32 %v516_v35 }
 0xb81   :  { %v1039_v36 = vpop.eup %1038 }
 0xb82   :  { %v530_v42 = vsub.f32 1.0, %v1039_v36  ;;  %v536_v44 = vmul.f32 %v1039_v36, %v434_v26 }
 0xbd2   :  { %v521_v37 = vpop.permute.xlu0 %520 }
 0xbd3   :  { %v523_v38 = vmul.f32 %v1039_v36, %v521_v37 }
 0xbd5   :  { %525 = vrot.lane.b32.xlu1 %v523_v38, %s1062_s21 }
 0xc47   :  { %v526_v39 = vpop.permute.xlu1 %525 }
 0xc48   :  { %v528_v40 = vadd.f32 %v868_v31, %v526_v39 }
 0xc4a   :  { %1040 = vtanh.f32 %v528_v40 }
 0xc57   :  { %v1041_v41 = vpop.eup %1040 }
 0xc58   :  { %532 = vrot.lane.b32.xlu0 %v1041_v41, %s1063_s2 }
 0xcca   :  { %v533_v43 = vpop.permute.xlu0 %532 }
 0xccb   :  { %v535_v45 = vmul.f32 %v533_v43, %v530_v42 }
 0xccd   :  { %v537_v46 = vadd.f32 %v536_v44, %v535_v45 }
 0xccf   :  { %541 = vrot.lane.b32.xlu1 %v537_v46, %s1063_s2 }
 0xd41   :  { %v542_v47 = vpop.permute.xlu1 %541 }
 0xd42   :  { %984 = vmatmul.mubr.msk.f32.vlgmr.msra.gmra.mxu1 %vm26_vm1, %v542_v47 }
 0xd43   :  { %998 = vmatpush3.msra.mxu1 %v1088_v1  ;;  %1005 = vmatprep.mubr.msk.f32.mxu1 %vm1061_vm0, %v1060_v0  ;;  %v871_v1 = vld [vmem:[%s1266_s0 + $0xa] sm:$0x3] }
 0xd44   :  { %999 = vmatprep.subr.mxu1 %v1060_v0 }
 0xd45   :  { %1000 = vmatpush3.msra.mxu1 %v1093_v2 }
 0xd46   :  { %1001 = vmatprep.subr.mxu1 %v1060_v0 }
 0xd47   :  { %1002 = vmatpush3.msra.mxu1 %v1103_v3 }
 0xd48   :  { %1003 = vmatprep.subr.mxu1 %v1060_v0 }
 0xd49   :  { %1004 = vmatpush3.msra.mxu1 %v1112_v4 }
 0xe02   :  { %v611_v48 = vpop.f32.mrf.mxu1 }
 0xe03   :  { %v612_v49 = vadd.f32 %v1140_v5, %v611_v48 }
 0xe04   :  { %v985_v50 = vpop.f32.mrf.mxu1 }
 0xe05   :  { %623 = vrot.lane.b32.xlu0 %v612_v49, %s1062_s21  ;;  %v615_v51 = vadd.f32 %v871_v1, %v612_v49 }
 0xe07   :  { %v873_v2 = vmul.f32 -1.442695, %v615_v51 }
 0xe09   :  { %1042 = vpow2.f32 %v873_v2 }
 0xe16   :  { %v1043_v52 = vpop.eup %1042 }
 0xe17   :  { %v619_v53 = vadd.f32 1.0, %v1043_v52 }
 0xe19   :  { %1044 = vrcp.f32 %v619_v53 }
 0xe26   :  { %v1045_v3 = vpop.eup %1044 }
 0xe27   :  { %v633_v57 = vsub.f32 1.0, %v1045_v3  ;;  %v639_v59 = vmul.f32 %v1045_v3, %v537_v46 }
 0xe77   :  { %v624_v0 = vpop.permute.xlu0 %623 }
 0xe78   :  { %v626_v54 = vmul.f32 %v1045_v3, %v624_v0 }
 0xe7a   :  { %628 = vrot.lane.b32.xlu1 %v626_v54, %s1062_s21 }
 0xeec   :  { %v629_v4 = vpop.permute.xlu1 %628 }
 0xeed   :  { %v631_v55 = vadd.f32 %v871_v1, %v629_v4 }
 0xeef   :  { %1046 = vtanh.f32 %v631_v55 }
 0xefc   :  { %v1047_v56 = vpop.eup %1046 }
 0xefd   :  { %635 = vrot.lane.b32.xlu0 %v1047_v56, %s1063_s2 }
 0xf6f   :  { %v636_v58 = vpop.permute.xlu0 %635 }
 0xf70   :  { %v638_v60 = vmul.f32 %v636_v58, %v633_v57 }
 0xf72   :  { %v640_v61 = vadd.f32 %v639_v59, %v638_v60 }
 0xf74   :  { %644 = vrot.lane.b32.xlu1 %v640_v61, %s1063_s2 }
 0xfe6   :  { %v645_v62 = vpop.permute.xlu1 %644 }
 0xfe7   :  { %995 = vmatmul.mubr.msk.f32.vlgmr.msra.gmra.mxu0 %vm26_vm1, %v645_v62 }
0x10a7   :  { %v714_v63 = vpop.f32.mrf.mxu0 }
0x10a8   :  { %v715_v6 = vadd.f32 %v1140_v5, %v714_v63 }
0x10a9   :  { %v996_v7 = vpop.f32.mrf.mxu0 }
0x10aa   :  { %726 = vrot.lane.b32.xlu0 %v715_v6, %s1062_s21  ;;  %v718_v9 = vadd.f32 %v874_v8, %v715_v6 }
0x10ac   :  { %v876_v10 = vmul.f32 -1.442695, %v718_v9 }
0x10ae   :  { %1048 = vpow2.f32 %v876_v10 }
0x10bb   :  { %v1049_v11 = vpop.eup %1048 }
0x10bc   :  { %v722_v12 = vadd.f32 1.0, %v1049_v11 }
0x10be   :  { %1050 = vrcp.f32 %v722_v12 }
0x10cb   :  { %v1051_v13 = vpop.eup %1050 }
0x10cc   :  { %v736_v19 = vsub.f32 1.0, %v1051_v13  ;;  %v742_v21 = vmul.f32 %v1051_v13, %v640_v61 }
0x111c   :  { %v727_v14 = vpop.permute.xlu0 %726 }
0x111d   :  { %v729_v15 = vmul.f32 %v1051_v13, %v727_v14 }
0x111f   :  { %731 = vrot.lane.b32.xlu1 %v729_v15, %s1062_s21 }
0x1191   :  { %v732_v16 = vpop.permute.xlu1 %731 }
0x1192   :  { %v734_v17 = vadd.f32 %v874_v8, %v732_v16 }
0x1194   :  { %1052 = vtanh.f32 %v734_v17 }
0x11a1   :  { %v1053_v18 = vpop.eup %1052 }
0x11a2   :  { %738 = vrot.lane.b32.xlu0 %v1053_v18, %s1063_s2 }
0x1214   :  { %v739_v20 = vpop.permute.xlu0 %738 }
0x1215   :  { %v741_v22 = vmul.f32 %v739_v20, %v736_v19 }
0x1217   :  { %v743_v23 = vadd.f32 %v742_v21, %v741_v22 }
0x1219   :  { %747 = vrot.lane.b32.xlu1 %v743_v23, %s1063_s2 }
0x128b   :  { %v748_v24 = vpop.permute.xlu1 %747 }
0x128c   :  { %1006 = vmatmul.mubr.msk.f32.vlgmr.msra.gmra.mxu1 %vm26_vm1, %v748_v24 }
0x134c   :  { %v817_v25 = vpop.f32.mrf.mxu1 }
0x134d   :  { %v818_v26 = vadd.f32 %v1140_v5, %v817_v25 }
0x134e   :  { %v1007_v27 = vpop.f32.mrf.mxu1 }
0x134f   :  { %829 = vrot.lane.b32.xlu0 %v818_v26, %s1062_s21  ;;  %v821_v29 = vadd.f32 %v877_v28, %v818_v26 }
0x1351   :  { %v879_v30 = vmul.f32 -1.442695, %v821_v29 }
0x1353   :  { %1054 = vpow2.f32 %v879_v30 }
0x1360   :  { %v1055_v31 = vpop.eup %1054 }
0x1361   :  { %v825_v32 = vadd.f32 1.0, %v1055_v31 }
0x1363   :  { %1056 = vrcp.f32 %v825_v32 }
0x1370   :  { %v1057_v33 = vpop.eup %1056 }
0x1371   :  { %v839_v38 = vsub.f32 1.0, %v1057_v33  ;;  %v845_v40 = vmul.f32 %v1057_v33, %v743_v23 }
0x13c1   :  { %v830_v34 = vpop.permute.xlu0 %829 }
0x13c2   :  { %v832_v35 = vmul.f32 %v1057_v33, %v830_v34 }
0x13c4   :  { %834 = vrot.lane.b32.xlu1 %v832_v35, %s1062_s21 }
0x1436   :  { %v835_v36 = vpop.permute.xlu1 %834 }
0x1437   :  { %v837_v5 = vadd.f32 %v877_v28, %v835_v36 }
0x1439   :  { %1058 = vtanh.f32 %v837_v5 }
0x1446   :  { %v1059_v37 = vpop.eup %1058 }
0x1447   :  { %841 = vrot.lane.b32.xlu0 %v1059_v37, %s1063_s2 }
0x14b9   :  { %v842_v39 = vpop.permute.xlu0 %841 }
0x14ba   :  { %v844_v41 = vmul.f32 %v842_v39, %v839_v38 }
0x14bc   :  { %v846_v42 = vadd.f32 %v845_v40, %v844_v41 }
0x14be   :  { %848 = vrot.lane.b32.xlu1 %v846_v42, %s1063_s2 }
0x1530   :  { %v849_v43 = vpop.permute.xlu1 %848 }
0x1531   :  { %852 = vst.msk [vmem:[%s1267_s3] sm:$0x3] %vm851_vm2, %v849_v43 }

// kernel: _forward_batch_impl.3
= control target key start
LH: loop header
LB: loop body
LE: loop exit
PB: predicated region body
PF: predicated region fallthrough
CT: control target
= control target key end

     0   :  { %10 = vsyncpa [#allocation3], 0  ;;  %s914_s18 = smov [#allocation2]   ;;  %s1211_s0 = inlined_call_operand.vmem [shape: f32[32,147], index: 0, kind: input, shape index: {}]   ;;  %s1212_s1 = inlined_call_operand.hbm [shape: f32[147,1024], index: 1, kind: input, shape index: {}]   ;;  %s1213_s2 = inlined_call_operand.vmem [shape: f32[1,1024], index: 2, kind: input, shape index: {}]   ;;  %s1214_s3 = inlined_call_operand.vmem [shape: f32[144,32], index: 3, kind: input, shape index: {}]   ;;  %s1215_s4 = inlined_call_operand.vmem [shape: f32[1,32], index: 4, kind: input, shape index: {}]   ;;  %s1216_s5 = inlined_call_operand.vmem [shape: f32[32,32], index: 5, kind: output, shape index: {}]  }
   0x1   :  { %s18_s19 = sshll.u32 %s914_s18, 4  ;;  %s19_s19 = int_to_ptr.vmem [resolvable:$true] %s18_s19 }
   0x2   :  { %s900_s20 = scalar_lea.vmem %s19_s19, 19456  ;;  %p905_p1 = scmp.lt.s32.totalorder %s19_s19, %s19_s19 }
   0x3   :  { %p901_p0 = scmp.ne.s32.totalorder %s19_s19, %s900_s20  ;;  %p906_p2 = scmp.lt.s32.totalorder %s900_s20, %s900_s20 }
   0x5   :  { %p907_p3 = por %p906_p2, %p905_p1 }
   0x7   :  { %p908_p4 = pnand %p907_p3, %p901_p0 }
   0x9   :  { %911 = shalt.err (!%p908_p4)
}
   0xa   :  { %s915_s21 = smov 1024   ;;  %s916_s22 = smov 64  }
   0xb   :  { %24 = dma.hbm_to_vmem [thread:$0]  %s1212_s1, 19456, %s19_s19, [#allocation3], %s915_s21, %s915_s21, %s916_s22  }
   0xc   :  { %912 = dma.done.wait [#allocation3], 19456  }
   0xd   :  { %913 = vsyncadd [#allocation3], 4294947840  ;;  %v163_v0 = vld [vmem:[#allocation2 + $0x3c8] sm:$0xff]  ;;  %v165_v1 = vld [vmem:[#allocation2 + $0x3d8] sm:$0xff]  ;;  %vm249_vm0 = vcmask 1042432   ;;  %vm236_vm1 = vcmask 154624  }
   0xe   :  { %v162_v2 = vld [vmem:[#allocation2 + $0x3c0] sm:$0xff]  ;;  %274 = vmatprep.subr.mxu0 %v163_v0  ;;  %363 = vmatprep.subr.mxu1 %v165_v1  ;;  %v164_v3 = vld [vmem:[#allocation2 + $0x3d0] sm:$0xff]  ;;  %v155_v4 = vld [vmem:[#allocation2 + $0x388] sm:$0xff]  ;;  %vm711_vm2 = vcmask 130048   ;;  %vm813_vm3 = vcmask 261120  }
   0xf   :  { %v157_v5 = vld [vmem:[#allocation2 + $0x398] sm:$0xff]  ;;  %275 = vmatpush1.msra.mxu0 %v162_v2  ;;  %364 = vmatpush1.msra.mxu1 %v164_v3  ;;  %v154_v6 = vld [vmem:[#allocation2 + $0x380] sm:$0xff]  ;;  %v156_v7 = vld [vmem:[#allocation2 + $0x390] sm:$0xff] }
  0x10   :  { %v147_v8 = vld [vmem:[#allocation2 + $0x348] sm:$0xff]  ;;  %276 = vmatprep.subr.mxu0 %v155_v4  ;;  %365 = vmatprep.subr.mxu1 %v157_v5  ;;  %v149_v9 = vld [vmem:[#allocation2 + $0x358] sm:$0xff]  ;;  %v146_v10 = vld [vmem:[#allocation2 + $0x340] sm:$0xff] }
  0x11   :  { %v148_v11 = vld [vmem:[#allocation2 + $0x350] sm:$0xff]  ;;  %277 = vmatpush1.msra.mxu0 %v154_v6  ;;  %366 = vmatpush1.msra.mxu1 %v156_v7  ;;  %v139_v12 = vld [vmem:[#allocation2 + $0x308] sm:$0xff]  ;;  %v141_v13 = vld [vmem:[#allocation2 + $0x318] sm:$0xff] }
  0x12   :  { %278 = vmatprep.subr.mxu0 %v147_v8  ;;  %367 = vmatprep.subr.mxu1 %v149_v9  ;;  %v138_v14 = vld [vmem:[#allocation2 + $0x300] sm:$0xff]  ;;  %v140_v15 = vld [vmem:[#allocation2 + $0x310] sm:$0xff]  ;;  %v131_v16 = vld [vmem:[#allocation2 + $0x2c8] sm:$0xff] }
  0x13   :  { %279 = vmatpush1.msra.mxu0 %v146_v10  ;;  %368 = vmatpush1.msra.mxu1 %v148_v11  ;;  %v133_v17 = vld [vmem:[#allocation2 + $0x2d8] sm:$0xff]  ;;  %v130_v18 = vld [vmem:[#allocation2 + $0x2c0] sm:$0xff]  ;;  %v132_v19 = vld [vmem:[#allocation2 + $0x2d0] sm:$0xff] }
  0x14   :  { %280 = vmatprep.subr.mxu0 %v139_v12  ;;  %369 = vmatprep.subr.mxu1 %v141_v13  ;;  %v123_v20 = vld [vmem:[#allocation2 + $0x288] sm:$0xff]  ;;  %v125_v21 = vld [vmem:[#allocation2 + $0x298] sm:$0xff]  ;;  %v122_v22 = vld [vmem:[#allocation2 + $0x280] sm:$0xff] }
  0x15   :  { %281 = vmatpush1.msra.mxu0 %v138_v14  ;;  %370 = vmatpush1.msra.mxu1 %v140_v15  ;;  %v124_v23 = vld [vmem:[#allocation2 + $0x290] sm:$0xff]  ;;  %v115_v24 = vld [vmem:[#allocation2 + $0x248] sm:$0xff]  ;;  %v117_v25 = vld [vmem:[#allocation2 + $0x258] sm:$0xff] }
  0x16   :  { %282 = vmatprep.subr.mxu0 %v131_v16  ;;  %371 = vmatprep.subr.mxu1 %v133_v17  ;;  %v114_v26 = vld [vmem:[#allocation2 + $0x240] sm:$0xff]  ;;  %v116_v27 = vld [vmem:[#allocation2 + $0x250] sm:$0xff]  ;;  %v107_v28 = vld [vmem:[#allocation2 + $0x208] sm:$0xff] }
  0x17   :  { %283 = vmatpush1.msra.mxu0 %v130_v18  ;;  %372 = vmatpush1.msra.mxu1 %v132_v19  ;;  %v109_v29 = vld [vmem:[#allocation2 + $0x218] sm:$0xff]  ;;  %v106_v30 = vld [vmem:[#allocation2 + $0x200] sm:$0xff]  ;;  %v108_v31 = vld [vmem:[#allocation2 + $0x210] sm:$0xff] }
  0x18   :  { %284 = vmatprep.subr.mxu0 %v123_v20  ;;  %373 = vmatprep.subr.mxu1 %v125_v21  ;;  %v99_v32 = vld [vmem:[#allocation2 + $0x1c8] sm:$0xff]  ;;  %v101_v33 = vld [vmem:[#allocation2 + $0x1d8] sm:$0xff]  ;;  %v98_v34 = vld [vmem:[#allocation2 + $0x1c0] sm:$0xff] }
  0x19   :  { %285 = vmatpush1.msra.mxu0 %v122_v22  ;;  %374 = vmatpush1.msra.mxu1 %v124_v23  ;;  %v100_v35 = vld [vmem:[#allocation2 + $0x1d0] sm:$0xff]  ;;  %v91_v36 = vld [vmem:[#allocation2 + $0x188] sm:$0xff]  ;;  %v93_v37 = vld [vmem:[#allocation2 + $0x198] sm:$0xff] }
  0x1a   :  { %286 = vmatprep.subr.mxu0 %v115_v24  ;;  %375 = vmatprep.subr.mxu1 %v117_v25  ;;  %v90_v38 = vld [vmem:[#allocation2 + $0x180] sm:$0xff]  ;;  %v92_v39 = vld [vmem:[#allocation2 + $0x190] sm:$0xff]  ;;  %v83_v40 = vld [vmem:[#allocation2 + $0x148] sm:$0xff] }
  0x1b   :  { %287 = vmatpush1.msra.mxu0 %v114_v26  ;;  %376 = vmatpush1.msra.mxu1 %v116_v27  ;;  %v85_v41 = vld [vmem:[#allocation2 + $0x158] sm:$0xff]  ;;  %v82_v42 = vld [vmem:[#allocation2 + $0x140] sm:$0xff]  ;;  %v84_v43 = vld [vmem:[#allocation2 + $0x150] sm:$0xff] }
  0x1c   :  { %288 = vmatprep.subr.mxu0 %v107_v28  ;;  %377 = vmatprep.subr.mxu1 %v109_v29  ;;  %v75_v44 = vld [vmem:[#allocation2 + $0x108] sm:$0xff]  ;;  %v77_v45 = vld [vmem:[#allocation2 + $0x118] sm:$0xff]  ;;  %v74_v46 = vld [vmem:[#allocation2 + $0x100] sm:$0xff] }
  0x1d   :  { %289 = vmatpush1.msra.mxu0 %v106_v30  ;;  %378 = vmatpush1.msra.mxu1 %v108_v31  ;;  %v76_v47 = vld [vmem:[#allocation2 + $0x110] sm:$0xff]  ;;  %v67_v48 = vld [vmem:[#allocation2 + $0xc8] sm:$0xff]  ;;  %v69_v49 = vld [vmem:[#allocation2 + $0xd8] sm:$0xff] }
  0x1e   :  { %290 = vmatprep.subr.mxu0 %v99_v32  ;;  %379 = vmatprep.subr.mxu1 %v101_v33  ;;  %v66_v50 = vld [vmem:[#allocation2 + $0xc0] sm:$0xff]  ;;  %v68_v51 = vld [vmem:[#allocation2 + $0xd0] sm:$0xff]  ;;  %v59_v52 = vld [vmem:[#allocation2 + $0x88] sm:$0xff] }
  0x1f   :  { %291 = vmatpush1.msra.mxu0 %v98_v34  ;;  %380 = vmatpush1.msra.mxu1 %v100_v35  ;;  %v61_v53 = vld [vmem:[#allocation2 + $0x98] sm:$0xff]  ;;  %v58_v54 = vld [vmem:[#allocation2 + $0x80] sm:$0xff]  ;;  %v60_v55 = vld [vmem:[#allocation2 + $0x90] sm:$0xff] }
  0x20   :  { %292 = vmatprep.subr.mxu0 %v91_v36  ;;  %381 = vmatprep.subr.mxu1 %v93_v37  ;;  %v51_v56 = vld [vmem:[#allocation2 + $0x48] sm:$0xff]  ;;  %v53_v57 = vld [vmem:[#allocation2 + $0x58] sm:$0xff]  ;;  %v50_v58 = vld [vmem:[#allocation2 + $0x40] sm:$0xff] }
  0x21   :  { %293 = vmatpush1.msra.mxu0 %v90_v38  ;;  %382 = vmatpush1.msra.mxu1 %v92_v39  ;;  %v52_v59 = vld [vmem:[#allocation2 + $0x50] sm:$0xff]  ;;  %v43_v60 = vld [vmem:[#allocation2 + $0x8] sm:$0xff]  ;;  %v45_v61 = vld [vmem:[#allocation2 + $0x18] sm:$0xff] }
  0x22   :  { %294 = vmatprep.subr.mxu0 %v83_v40  ;;  %383 = vmatprep.subr.mxu1 %v85_v41  ;;  %v42_v62 = vld [vmem:[#allocation2] sm:$0xff]  ;;  %v44_v63 = vld [vmem:[#allocation2 + $0x10] sm:$0xff]  ;;  %v187_v0 = vld [vmem:[#allocation2 + $0x488] sm:$0x7] }
  0x23   :  { %295 = vmatpush1.msra.mxu0 %v82_v42  ;;  %384 = vmatpush1.msra.mxu1 %v84_v43  ;;  %v189_v1 = vld [vmem:[#allocation2 + $0x498] sm:$0x7]  ;;  %v186_v2 = vld [vmem:[#allocation2 + $0x480] sm:$0x7]  ;;  %v188_v3 = vld [vmem:[#allocation2 + $0x490] sm:$0x7] }
  0x24   :  { %296 = vmatprep.subr.mxu0 %v75_v44  ;;  %385 = vmatprep.subr.mxu1 %v77_v45  ;;  %v179_v4 = vld [vmem:[#allocation2 + $0x448] sm:$0xff]  ;;  %v181_v5 = vld [vmem:[#allocation2 + $0x458] sm:$0xff]  ;;  %v178_v6 = vld [vmem:[#allocation2 + $0x440] sm:$0xff] }
  0x25   :  { %297 = vmatpush1.msra.mxu0 %v74_v46  ;;  %386 = vmatpush1.msra.mxu1 %v76_v47  ;;  %v180_v7 = vld [vmem:[#allocation2 + $0x450] sm:$0xff]  ;;  %v171_v8 = vld [vmem:[#allocation2 + $0x408] sm:$0xff]  ;;  %v173_v9 = vld [vmem:[#allocation2 + $0x418] sm:$0xff] }
  0x26   :  { %298 = vmatprep.subr.mxu0 %v67_v48  ;;  %387 = vmatprep.subr.mxu1 %v69_v49  ;;  %v170_v10 = vld [vmem:[#allocation2 + $0x400] sm:$0xff]  ;;  %v958_v11 = vld [vmem:[%s1211_s0 + $0x8] sm:$0xff]  ;;  %v172_v12 = vld [vmem:[#allocation2 + $0x410] sm:$0xff] }
  0x27   :  { %299 = vmatpush1.msra.mxu0 %v66_v50  ;;  %388 = vmatpush1.msra.mxu1 %v68_v51  ;;  %v963_v13 = vld [vmem:[%s1211_s0] sm:$0xff]  ;;  %v167_v14 = vld [vmem:[#allocation2 + $0x3e8] sm:$0xff]  ;;  %v169_v15 = vld [vmem:[#allocation2 + $0x3f8] sm:$0xff] }
  0x28   :  { %300 = vmatprep.subr.mxu0 %v59_v52  ;;  %389 = vmatprep.subr.mxu1 %v61_v53  ;;  %v166_v16 = vld [vmem:[#allocation2 + $0x3e0] sm:$0xff]  ;;  %v168_v17 = vld [vmem:[#allocation2 + $0x3f0] sm:$0xff]  ;;  %v159_v18 = vld [vmem:[#allocation2 + $0x3a8] sm:$0xff] }
  0x29   :  { %301 = vmatpush1.msra.mxu0 %v58_v54  ;;  %390 = vmatpush1.msra.mxu1 %v60_v55  ;;  %v161_v19 = vld [vmem:[#allocation2 + $0x3b8] sm:$0xff]  ;;  %v158_v20 = vld [vmem:[#allocation2 + $0x3a0] sm:$0xff]  ;;  %v160_v21 = vld [vmem:[#allocation2 + $0x3b0] sm:$0xff] }
  0x2a   :  { %302 = vmatprep.subr.mxu0 %v51_v56  ;;  %391 = vmatprep.subr.mxu1 %v53_v57  ;;  %v151_v22 = vld [vmem:[#allocation2 + $0x368] sm:$0xff]  ;;  %v153_v23 = vld [vmem:[#allocation2 + $0x378] sm:$0xff]  ;;  %v150_v24 = vld [vmem:[#allocation2 + $0x360] sm:$0xff] }
  0x2b   :  { %303 = vmatpush1.msra.mxu0 %v50_v58  ;;  %392 = vmatpush1.msra.mxu1 %v52_v59  ;;  %v152_v25 = vld [vmem:[#allocation2 + $0x370] sm:$0xff]  ;;  %v143_v26 = vld [vmem:[#allocation2 + $0x328] sm:$0xff]  ;;  %v145_v27 = vld [vmem:[#allocation2 + $0x338] sm:$0xff] }
  0x2c   :  { %304 = vmatprep.subr.mxu0 %v43_v60  ;;  %393 = vmatprep.subr.mxu1 %v45_v61  ;;  %v142_v28 = vld [vmem:[#allocation2 + $0x320] sm:$0xff]  ;;  %v144_v29 = vld [vmem:[#allocation2 + $0x330] sm:$0xff]  ;;  %v135_v30 = vld [vmem:[#allocation2 + $0x2e8] sm:$0xff] }
  0x2d   :  { %305 = vmatpush1.msra.mxu0 %v42_v62  ;;  %394 = vmatpush1.msra.mxu1 %v44_v63  ;;  %v137_v31 = vld [vmem:[#allocation2 + $0x2f8] sm:$0xff]  ;;  %v134_v32 = vld [vmem:[#allocation2 + $0x2e0] sm:$0xff]  ;;  %v136_v33 = vld [vmem:[#allocation2 + $0x2f0] sm:$0xff] }
  0x2e   :  { %823 = vmatprep.subr.msk.mxu0 %vm249_vm0, %v187_v0  ;;  %829 = vmatprep.subr.msk.mxu1 %vm249_vm0, %v189_v1  ;;  %v127_v34 = vld [vmem:[#allocation2 + $0x2a8] sm:$0xff]  ;;  %v129_v35 = vld [vmem:[#allocation2 + $0x2b8] sm:$0xff]  ;;  %v126_v36 = vld [vmem:[#allocation2 + $0x2a0] sm:$0xff] }
  0x2f   :  { %824 = vmatpush2.msk.msra.mxu0 %vm249_vm0, %v186_v2  ;;  %830 = vmatpush2.msk.msra.mxu1 %vm249_vm0, %v188_v3  ;;  %v128_v37 = vld [vmem:[#allocation2 + $0x2b0] sm:$0xff]  ;;  %v119_v38 = vld [vmem:[#allocation2 + $0x268] sm:$0xff]  ;;  %v121_v39 = vld [vmem:[#allocation2 + $0x278] sm:$0xff] }
  0x30   :  { %334 = vmatprep.subr.mxu0 %v179_v4  ;;  %423 = vmatprep.subr.mxu1 %v181_v5  ;;  %v118_v40 = vld [vmem:[#allocation2 + $0x260] sm:$0xff]  ;;  %v120_v41 = vld [vmem:[#allocation2 + $0x270] sm:$0xff]  ;;  %v111_v42 = vld [vmem:[#allocation2 + $0x228] sm:$0xff] }
  0x31   :  { %335 = vmatpush2.msra.mxu0 %v178_v6  ;;  %424 = vmatpush2.msra.mxu1 %v180_v7  ;;  %v113_v43 = vld [vmem:[#allocation2 + $0x238] sm:$0xff]  ;;  %v110_v44 = vld [vmem:[#allocation2 + $0x220] sm:$0xff]  ;;  %v112_v45 = vld [vmem:[#allocation2 + $0x230] sm:$0xff] }
  0x32   :  { %336 = vmatprep.subr.mxu0 %v171_v8  ;;  %425 = vmatprep.subr.mxu1 %v173_v9  ;;  %v103_v46 = vld [vmem:[#allocation2 + $0x1e8] sm:$0xff]  ;;  %v105_v47 = vld [vmem:[#allocation2 + $0x1f8] sm:$0xff]  ;;  %v102_v48 = vld [vmem:[#allocation2 + $0x1e0] sm:$0xff] }
  0x33   :  { %337 = vmatpush2.msra.mxu0 %v170_v10  ;;  %825 = vmatprep.mubr.msk.f32.mxu0 %vm236_vm1, %v958_v11  ;;  %v104_v49 = vld [vmem:[#allocation2 + $0x1f0] sm:$0xff]  ;;  %v95_v50 = vld [vmem:[#allocation2 + $0x1a8] sm:$0xff]  ;;  %v97_v51 = vld [vmem:[#allocation2 + $0x1b8] sm:$0xff] }
  0x34   :  { %426 = vmatpush2.msra.mxu1 %v172_v12  ;;  %831 = vmatprep.mubr.msk.f32.mxu1 %vm236_vm1, %v958_v11  ;;  %v94_v52 = vld [vmem:[#allocation2 + $0x1a0] sm:$0xff]  ;;  %v96_v53 = vld [vmem:[#allocation2 + $0x1b0] sm:$0xff]  ;;  %v87_v54 = vld [vmem:[#allocation2 + $0x168] sm:$0xff] }
  0x35   :  { %339 = vmatmul.mubr.f32.vlgmr.msra.gmra.mxu0 %v963_v13  ;;  %428 = vmatmul.mubr.f32.vlgmr.msra.gmra.mxu1 %v963_v13  ;;  %v89_v55 = vld [vmem:[#allocation2 + $0x178] sm:$0xff]  ;;  %v86_v56 = vld [vmem:[#allocation2 + $0x160] sm:$0xff]  ;;  %v88_v57 = vld [vmem:[#allocation2 + $0x170] sm:$0xff] }
  0x36   :  { %452 = vmatprep.subr.mxu0 %v167_v14  ;;  %541 = vmatprep.subr.mxu1 %v169_v15  ;;  %v79_v58 = vld [vmem:[#allocation2 + $0x128] sm:$0xff]  ;;  %v81_v59 = vld [vmem:[#allocation2 + $0x138] sm:$0xff]  ;;  %v78_v61 = vld [vmem:[#allocation2 + $0x120] sm:$0xff] }
  0x37   :  { %453 = vmatpush1.msra.mxu0 %v166_v16  ;;  %542 = vmatpush1.msra.mxu1 %v168_v17  ;;  %v974_v60 = vld [vmem:[%s1211_s0 + $0x18] sm:$0xff]  ;;  %v80_v62 = vld [vmem:[#allocation2 + $0x130] sm:$0xff]  ;;  %v71_v0 = vld [vmem:[#allocation2 + $0xe8] sm:$0xff] }
  0x38   :  { %454 = vmatprep.subr.mxu0 %v159_v18  ;;  %543 = vmatprep.subr.mxu1 %v161_v19  ;;  %v979_v63 = vld [vmem:[%s1211_s0 + $0x10] sm:$0xff]  ;;  %v73_v1 = vld [vmem:[#allocation2 + $0xf8] sm:$0xff]  ;;  %v70_v2 = vld [vmem:[#allocation2 + $0xe0] sm:$0xff] }
  0x39   :  { %455 = vmatpush1.msra.mxu0 %v158_v20  ;;  %544 = vmatpush1.msra.mxu1 %v160_v21  ;;  %v72_v3 = vld [vmem:[#allocation2 + $0xf0] sm:$0xff]  ;;  %v63_v4 = vld [vmem:[#allocation2 + $0xa8] sm:$0xff]  ;;  %v65_v5 = vld [vmem:[#allocation2 + $0xb8] sm:$0xff] }
  0x3a   :  { %456 = vmatprep.subr.mxu0 %v151_v22  ;;  %545 = vmatprep.subr.mxu1 %v153_v23  ;;  %v990_v6 = vld [vmem:[%s1211_s0 + $0x28] sm:$0xff]  ;;  %v62_v7 = vld [vmem:[#allocation2 + $0xa0] sm:$0xff]  ;;  %v64_v8 = vld [vmem:[#allocation2 + $0xb0] sm:$0xff] }
  0x3b   :  { %457 = vmatpush1.msra.mxu0 %v150_v24  ;;  %546 = vmatpush1.msra.mxu1 %v152_v25  ;;  %v995_v9 = vld [vmem:[%s1211_s0 + $0x20] sm:$0xff]  ;;  %v55_v10 = vld [vmem:[#allocation2 + $0x68] sm:$0xff]  ;;  %v57_v12 = vld [vmem:[#allocation2 + $0x78] sm:$0xff] }
  0x3c   :  { %458 = vmatprep.subr.mxu0 %v143_v26  ;;  %547 = vmatprep.subr.mxu1 %v145_v27  ;;  %v54_v14 = vld [vmem:[#allocation2 + $0x60] sm:$0xff]  ;;  %v56_v15 = vld [vmem:[#allocation2 + $0x70] sm:$0xff]  ;;  %v47_v16 = vld [vmem:[#allocation2 + $0x28] sm:$0xff] }
  0x3d   :  { %459 = vmatpush1.msra.mxu0 %v142_v28  ;;  %548 = vmatpush1.msra.mxu1 %v144_v29  ;;  %v49_v17 = vld [vmem:[#allocation2 + $0x38] sm:$0xff]  ;;  %v46_v19 = vld [vmem:[#allocation2 + $0x20] sm:$0xff]  ;;  %v48_v20 = vld [vmem:[#allocation2 + $0x30] sm:$0xff] }
  0x3e   :  { %460 = vmatprep.subr.mxu0 %v135_v30  ;;  %549 = vmatprep.subr.mxu1 %v137_v31  ;;  %v41_v18 = vld [vmem:[%s1211_s0 + $0x38] sm:$0xff]  ;;  %v40_v21 = vld [vmem:[%s1211_s0 + $0x30] sm:$0xff]  ;;  %v191_v22 = vld [vmem:[#allocation2 + $0x4a8] sm:$0x7] }
  0x3f   :  { %461 = vmatpush1.msra.mxu0 %v134_v32  ;;  %550 = vmatpush1.msra.mxu1 %v136_v33  ;;  %v193_v23 = vld [vmem:[#allocation2 + $0x4b8] sm:$0x7]  ;;  %v190_v24 = vld [vmem:[#allocation2 + $0x4a0] sm:$0x7]  ;;  %v192_v25 = vld [vmem:[#allocation2 + $0x4b0] sm:$0x7] }
  0x40   :  { %462 = vmatprep.subr.mxu0 %v127_v34  ;;  %551 = vmatprep.subr.mxu1 %v129_v35  ;;  %v183_v26 = vld [vmem:[#allocation2 + $0x468] sm:$0xff]  ;;  %v185_v27 = vld [vmem:[#allocation2 + $0x478] sm:$0xff]  ;;  %v182_v28 = vld [vmem:[#allocation2 + $0x460] sm:$0xff] }
  0x41   :  { %463 = vmatpush1.msra.mxu0 %v126_v36  ;;  %552 = vmatpush1.msra.mxu1 %v128_v37  ;;  %v184_v29 = vld [vmem:[#allocation2 + $0x470] sm:$0xff]  ;;  %v175_v30 = vld [vmem:[#allocation2 + $0x428] sm:$0xff]  ;;  %v177_v31 = vld [vmem:[#allocation2 + $0x438] sm:$0xff] }
  0x42   :  { %464 = vmatprep.subr.mxu0 %v119_v38  ;;  %553 = vmatprep.subr.mxu1 %v121_v39  ;;  %v174_v32 = vld [vmem:[#allocation2 + $0x420] sm:$0xff]  ;;  %v176_v33 = vld [vmem:[#allocation2 + $0x430] sm:$0xff]  ;;  %v699_v35 = vld [vmem:[%s1214_s3 + $0x68] sm:$0xff] }
  0x43   :  { %465 = vmatpush1.msra.mxu0 %v118_v40  ;;  %554 = vmatpush1.msra.mxu1 %v120_v41  ;;  %v700_v34 = vld [vmem:[%s1214_s3 + $0x70] sm:$0xff]  ;;  %v698_v36 = vld [vmem:[%s1214_s3 + $0x60] sm:$0xff]  ;;  %v697_v37 = vld [vmem:[%s1214_s3 + $0x58] sm:$0xff] }
  0x44   :  { %466 = vmatprep.subr.mxu0 %v111_v42  ;;  %555 = vmatprep.subr.mxu1 %v113_v43  ;;  %v696_v38 = vld [vmem:[%s1214_s3 + $0x50] sm:$0xff]  ;;  %v695_v39 = vld [vmem:[%s1214_s3 + $0x48] sm:$0xff]  ;;  %v694_v40 = vld [vmem:[%s1214_s3 + $0x40] sm:$0xff] }
  0x45   :  { %467 = vmatpush1.msra.mxu0 %v110_v44  ;;  %556 = vmatpush1.msra.mxu1 %v112_v45  ;;  %v693_v41 = vld [vmem:[%s1214_s3 + $0x38] sm:$0xff]  ;;  %v692_v42 = vld [vmem:[%s1214_s3 + $0x30] sm:$0xff]  ;;  %v691_v43 = vld [vmem:[%s1214_s3 + $0x28] sm:$0xff] }
  0x46   :  { %468 = vmatprep.subr.mxu0 %v103_v46  ;;  %557 = vmatprep.subr.mxu1 %v105_v47  ;;  %v690_v44 = vld [vmem:[%s1214_s3 + $0x20] sm:$0xff]  ;;  %v689_v45 = vld [vmem:[%s1214_s3 + $0x18] sm:$0xff]  ;;  %v688_v46 = vld [vmem:[%s1214_s3 + $0x10] sm:$0xff] }
  0x47   :  { %469 = vmatpush1.msra.mxu0 %v102_v48  ;;  %558 = vmatpush1.msra.mxu1 %v104_v49  ;;  %v687_v47 = vld [vmem:[%s1214_s3 + $0x8] sm:$0xff]  ;;  %v686_v48 = vld [vmem:[%s1214_s3] sm:$0xff] }
  0x48   :  { %470 = vmatprep.subr.mxu0 %v95_v50  ;;  %559 = vmatprep.subr.mxu1 %v97_v51  ;;  %v703_v49 = vld [vmem:[%s1214_s3 + $0x88] sm:$0xff]  ;;  %v702_v50 = vld [vmem:[%s1214_s3 + $0x80] sm:$0xff] }
  0x49   :  { %471 = vmatpush1.msra.mxu0 %v94_v52  ;;  %560 = vmatpush1.msra.mxu1 %v96_v53 }
  0x4a   :  { %472 = vmatprep.subr.mxu0 %v87_v54  ;;  %561 = vmatprep.subr.mxu1 %v89_v55  ;;  %v196_v55 = vlaneseq }
  0x4b   :  { %473 = vmatpush1.msra.mxu0 %v86_v56  ;;  %562 = vmatpush1.msra.mxu1 %v88_v57 }
  0x4c   :  { %474 = vmatprep.subr.mxu0 %v79_v58  ;;  %563 = vmatprep.subr.mxu1 %v81_v59 }
  0x4d   :  { %826 = vmatprep.mubr.msk.f32.mxu0 %vm236_vm1, %v974_v60  ;;  %832 = vmatprep.mubr.msk.f32.mxu1 %vm236_vm1, %v974_v60 }
  0x4e   :  { %475 = vmatpush1.msra.mxu0 %v78_v61  ;;  %564 = vmatpush1.msra.mxu1 %v80_v62 }
  0x4f   :  { %345 = vmatmul.mubr.f32.gmra.mxu0 %v979_v63  ;;  %434 = vmatmul.mubr.f32.gmra.mxu1 %v979_v63 }
  0x50   :  { %476 = vmatprep.subr.mxu0 %v71_v0  ;;  %565 = vmatprep.subr.mxu1 %v73_v1  ;;  %v194_v1 = vld [vmem:[%s1213_s2] sm:$0xff] }
  0x51   :  { %477 = vmatpush1.msra.mxu0 %v70_v2  ;;  %566 = vmatpush1.msra.mxu1 %v72_v3 }
  0x52   :  { %478 = vmatprep.subr.mxu0 %v63_v4  ;;  %567 = vmatprep.subr.mxu1 %v65_v5 }
  0x53   :  { %827 = vmatprep.mubr.msk.f32.mxu0 %vm236_vm1, %v990_v6  ;;  %833 = vmatprep.mubr.msk.f32.mxu1 %vm236_vm1, %v990_v6 }
  0x54   :  { %479 = vmatpush1.msra.mxu0 %v62_v7  ;;  %568 = vmatpush1.msra.mxu1 %v64_v8 }
  0x55   :  { %351 = vmatmul.mubr.f32.gmra.mxu0 %v995_v9  ;;  %440 = vmatmul.mubr.f32.gmra.mxu1 %v995_v9 }
  0x56   :  { %480 = vmatprep.subr.mxu0 %v55_v10  ;;  %569 = vmatprep.subr.mxu1 %v57_v12 }
  0x57   :  { %481 = vmatpush1.msra.mxu0 %v54_v14  ;;  %570 = vmatpush1.msra.mxu1 %v56_v15 }
  0x58   :  { %482 = vmatprep.subr.mxu0 %v47_v16  ;;  %571 = vmatprep.subr.mxu1 %v49_v17 }
  0x59   :  { %828 = vmatprep.mubr.msk.f32.mxu0 %vm236_vm1, %v41_v18  ;;  %834 = vmatprep.mubr.msk.f32.mxu1 %vm236_vm1, %v41_v18 }
  0x5a   :  { %483 = vmatpush1.msra.mxu0 %v46_v19  ;;  %572 = vmatpush1.msra.mxu1 %v48_v20 }
  0x5b   :  { %357 = vmatmul.mubr.f32.gmra.mxu0 %v40_v21  ;;  %446 = vmatmul.mubr.f32.gmra.mxu1 %v40_v21 }
  0x5c   :  { %835 = vmatprep.subr.msk.mxu0 %vm249_vm0, %v191_v22  ;;  %841 = vmatprep.subr.msk.mxu1 %vm249_vm0, %v193_v23 }
  0x5d   :  { %836 = vmatpush2.msk.msra.mxu0 %vm249_vm0, %v190_v24  ;;  %842 = vmatpush2.msk.msra.mxu1 %vm249_vm0, %v192_v25 }
  0x5e   :  { %512 = vmatprep.subr.mxu0 %v183_v26  ;;  %601 = vmatprep.subr.mxu1 %v185_v27 }
  0x5f   :  { %513 = vmatpush2.msra.mxu0 %v182_v28  ;;  %602 = vmatpush2.msra.mxu1 %v184_v29 }
  0x60   :  { %514 = vmatprep.subr.mxu0 %v175_v30  ;;  %603 = vmatprep.subr.mxu1 %v177_v31 }
  0x61   :  { %515 = vmatpush2.msra.mxu0 %v174_v32  ;;  %837 = vmatprep.mubr.msk.f32.mxu0 %vm236_vm1, %v958_v11 }
  0x62   :  { %604 = vmatpush2.msra.mxu1 %v176_v33  ;;  %843 = vmatprep.mubr.msk.f32.mxu1 %vm236_vm1, %v958_v11  ;;  %v701_v11 = vld [vmem:[%s1214_s3 + $0x78] sm:$0xff] }
  0x63   :  { %517 = vmatmul.mubr.f32.vlgmr.msra.gmra.mxu0 %v963_v13  ;;  %606 = vmatmul.mubr.f32.vlgmr.msra.gmra.mxu1 %v963_v13  ;;  %v917_v13 = vmov 0.0  }
  0x64   :  { %838 = vmatprep.mubr.msk.f32.mxu0 %vm236_vm1, %v974_v60  ;;  %844 = vmatprep.mubr.msk.f32.mxu1 %vm236_vm1, %v974_v60  ;;  %v197_v60 = vshrl.u32 %v196_v55, 7 }
  0x65   :  { %724 = vmatprep.subr.mxu0 %v917_v13  ;;  %852 = vmatprep.subr.mxu1 %v917_v13 }
  0x66   :  { %725 = vmatpush1.msra.mxu0 %v701_v11  ;;  %870 = vmatpush1.msra.mxu1 %v701_v11  ;;  %v206_v0 = vsub.s32 2, %v197_v60  ;;  %v202_v2 = vsub.s32 1, %v197_v60  ;;  %v210_v3 = vsub.s32 3, %v197_v60  ;;  %v214_v10 = vsub.s32 4, %v197_v60 }
  0x67   :  { %523 = vmatmul.mubr.f32.gmra.mxu0 %v979_v63  ;;  %612 = vmatmul.mubr.f32.gmra.mxu1 %v979_v63  ;;  %v198_v63 = vsub.s32 0, %v197_v60  ;;  %v222_v12 = vsub.s32 6, %v197_v60  ;;  %v218_v16 = vsub.s32 5, %v197_v60  ;;  %v226_v17 = vsub.s32 7, %v197_v60 }
  0x68   :  { %839 = vmatprep.mubr.msk.f32.mxu0 %vm236_vm1, %v990_v6  ;;  %845 = vmatprep.mubr.msk.f32.mxu1 %vm236_vm1, %v990_v6  ;;  %v1130_v7 = vrot.slane %v194_v1, %v206_v0  ;;  %v1132_v8 = vrot.slane %v194_v1, %v202_v2  ;;  %v1144_v22 = vrot.slane %v194_v1, %v214_v10 }
  0x69   :  { %726 = vmatprep.subr.mxu0 %v917_v13  ;;  %853 = vmatprep.subr.mxu1 %v917_v13  ;;  %v1128_v6 = vrot.slane %v194_v1, %v198_v63  ;;  %v1146_v23 = vrot.slane %v194_v1, %v222_v12  ;;  %v1156_v30 = vrot.slane %v194_v1, %v218_v16 }
  0x6a   :  { %727 = vmatpush1.msra.mxu0 %v700_v34  ;;  %871 = vmatpush1.msra.mxu1 %v700_v34  ;;  %v1158_v31 = vrot.slane %v194_v1, %v226_v17 }
  0x6b   :  { %529 = vmatmul.mubr.f32.gmra.mxu0 %v995_v9  ;;  %618 = vmatmul.mubr.f32.gmra.mxu1 %v995_v9  ;;  %v1134_v9 = vrot.slane %v194_v1, %v210_v3 }
  0x6c   :  { %840 = vmatprep.mubr.msk.f32.mxu0 %vm236_vm1, %v41_v18  ;;  %846 = vmatprep.mubr.msk.f32.mxu1 %vm236_vm1, %v41_v18 }
  0x6d   :  { %728 = vmatprep.subr.mxu0 %v917_v13  ;;  %854 = vmatprep.subr.mxu1 %v917_v13 }
  0x6e   :  { %729 = vmatpush1.msra.mxu0 %v699_v35  ;;  %872 = vmatpush1.msra.mxu1 %v699_v35 }
  0x6f   :  { %535 = vmatmul.mubr.f32.gmra.mxu0 %v40_v21  ;;  %624 = vmatmul.mubr.f32.gmra.mxu1 %v40_v21 }
  0x70   :  { %730 = vmatprep.subr.mxu0 %v917_v13  ;;  %855 = vmatprep.subr.mxu1 %v917_v13 }
  0x71   :  { %731 = vmatpush1.msra.mxu0 %v698_v36  ;;  %873 = vmatpush1.msra.mxu1 %v698_v36 }
  0x72   :  { %732 = vmatprep.subr.mxu0 %v917_v13  ;;  %856 = vmatprep.subr.mxu1 %v917_v13 }
  0x73   :  { %733 = vmatpush1.msra.mxu0 %v697_v37  ;;  %874 = vmatpush1.msra.mxu1 %v697_v37 }
  0x74   :  { %734 = vmatprep.subr.mxu0 %v917_v13  ;;  %857 = vmatprep.subr.mxu1 %v917_v13 }
  0x75   :  { %735 = vmatpush1.msra.mxu0 %v696_v38  ;;  %875 = vmatpush1.msra.mxu1 %v696_v38 }
  0x76   :  { %736 = vmatprep.subr.mxu0 %v917_v13  ;;  %858 = vmatprep.subr.mxu1 %v917_v13 }
  0x77   :  { %737 = vmatpush1.msra.mxu0 %v695_v39  ;;  %876 = vmatpush1.msra.mxu1 %v695_v39 }
  0x78   :  { %738 = vmatprep.subr.mxu0 %v917_v13  ;;  %859 = vmatprep.subr.mxu1 %v917_v13 }
  0x79   :  { %739 = vmatpush1.msra.mxu0 %v694_v40  ;;  %877 = vmatpush1.msra.mxu1 %v694_v40 }
  0x7a   :  { %740 = vmatprep.subr.mxu0 %v917_v13  ;;  %860 = vmatprep.subr.mxu1 %v917_v13 }
  0x7b   :  { %741 = vmatpush1.msra.mxu0 %v693_v41  ;;  %878 = vmatpush1.msra.mxu1 %v693_v41 }
  0x7c   :  { %742 = vmatprep.subr.mxu0 %v917_v13  ;;  %861 = vmatprep.subr.mxu1 %v917_v13 }
  0x7d   :  { %743 = vmatpush1.msra.mxu0 %v692_v42  ;;  %879 = vmatpush1.msra.mxu1 %v692_v42 }
  0x7e   :  { %744 = vmatprep.subr.mxu0 %v917_v13  ;;  %862 = vmatprep.subr.mxu1 %v917_v13 }
  0x7f   :  { %745 = vmatpush1.msra.mxu0 %v691_v43  ;;  %880 = vmatpush1.msra.mxu1 %v691_v43 }
  0x80   :  { %746 = vmatprep.subr.mxu0 %v917_v13  ;;  %863 = vmatprep.subr.mxu1 %v917_v13 }
  0x81   :  { %747 = vmatpush1.msra.mxu0 %v690_v44  ;;  %881 = vmatpush1.msra.mxu1 %v690_v44 }
  0x82   :  { %748 = vmatprep.subr.mxu0 %v917_v13  ;;  %864 = vmatprep.subr.mxu1 %v917_v13 }
  0x83   :  { %749 = vmatpush1.msra.mxu0 %v689_v45  ;;  %882 = vmatpush1.msra.mxu1 %v689_v45 }
  0x84   :  { %750 = vmatprep.subr.mxu0 %v917_v13  ;;  %865 = vmatprep.subr.mxu1 %v917_v13 }
  0x85   :  { %751 = vmatpush1.msra.mxu0 %v688_v46  ;;  %883 = vmatpush1.msra.mxu1 %v688_v46 }
  0x86   :  { %752 = vmatprep.subr.mxu0 %v917_v13  ;;  %866 = vmatprep.subr.mxu1 %v917_v13 }
  0x87   :  { %753 = vmatpush1.msra.mxu0 %v687_v47  ;;  %884 = vmatpush1.msra.mxu1 %v687_v47 }
  0x88   :  { %754 = vmatprep.subr.mxu0 %v917_v13  ;;  %867 = vmatprep.subr.mxu1 %v917_v13 }
  0x89   :  { %755 = vmatpush1.msra.mxu0 %v686_v48  ;;  %885 = vmatpush1.msra.mxu1 %v686_v48 }
  0x8a   :  { %784 = vmatprep.subr.mxu0 %v917_v13  ;;  %868 = vmatprep.subr.mxu1 %v917_v13 }
  0x8b   :  { %785 = vmatpush2.msra.mxu0 %v703_v49  ;;  %886 = vmatpush2.msra.mxu1 %v703_v49 }
  0x8c   :  { %786 = vmatprep.subr.mxu0 %v917_v13  ;;  %869 = vmatprep.subr.mxu1 %v917_v13 }
  0x8d   :  { %787 = vmatpush2.msra.mxu0 %v702_v50  ;;  %887 = vmatpush2.msra.mxu1 %v702_v50 }
  0xf5   :  { %v340_v51 = vpop.f32.mrf.mxu0  ;;  %v429_v52 = vpop.f32.mrf.mxu1 }
  0xf6   :  { %v341_v18 = vadd.f32 %v340_v51, %v1128_v6  ;;  %v430_v19 = vadd.f32 %v429_v52, %v1130_v7 }
  0xf7   :  { %v342_v53 = vpop.f32.mrf.mxu0  ;;  %v431_v54 = vpop.f32.mrf.mxu1 }
  0xf8   :  { %v343_v20 = vadd.f32 %v342_v53, %v1132_v8  ;;  %v432_v21 = vadd.f32 %v431_v54, %v1134_v9  ;;  %v630_v32 = vmax.f32 %v341_v18, 0.0  ;;  %v632_v33 = vmax.f32 %v430_v19, 0.0 }
  0xfa   :  { %v631_v36 = vmax.f32 %v343_v20, 0.0  ;;  %v633_v37 = vmax.f32 %v432_v21, 0.0  ;;  %v662_v50 = vmax.f32 %v630_v32, %v632_v33 }
 0x10f   :  { %v346_v56 = vpop.f32.mrf.mxu0  ;;  %v435_v57 = vpop.f32.mrf.mxu1 }
 0x110   :  { %v347_v24 = vadd.f32 %v346_v56, %v1128_v6  ;;  %v436_v25 = vadd.f32 %v435_v57, %v1130_v7  ;;  %v663_v56 = vmax.f32 %v631_v36, %v633_v37 }
 0x111   :  { %v348_v58 = vpop.f32.mrf.mxu0  ;;  %v437_v59 = vpop.f32.mrf.mxu1 }
 0x112   :  { %v349_v26 = vadd.f32 %v348_v58, %v1132_v8  ;;  %v438_v27 = vadd.f32 %v437_v59, %v1134_v9  ;;  %v638_v40 = vmax.f32 %v347_v24, 0.0  ;;  %v640_v41 = vmax.f32 %v436_v25, 0.0 }
 0x114   :  { %v639_v42 = vmax.f32 %v349_v26, 0.0  ;;  %v641_v43 = vmax.f32 %v438_v27, 0.0  ;;  %v664_v60 = vmax.f32 %v638_v40, %v640_v41 }
 0x115   :  { %v352_v61 = vpop.f32.mrf.mxu0  ;;  %v441_v62 = vpop.f32.mrf.mxu1 }
 0x116   :  { %v353_v11 = vadd.f32 %v352_v61, %v1128_v6  ;;  %v442_v13 = vadd.f32 %v441_v62, %v1130_v7  ;;  %v665_v2 = vmax.f32 %v639_v42, %v641_v43 }
 0x117   :  { %v354_v4 = vpop.f32.mrf.mxu0  ;;  %v443_v5 = vpop.f32.mrf.mxu1 }
 0x118   :  { %v646_v51 = vmax.f32 %v353_v11, 0.0  ;;  %v648_v52 = vmax.f32 %v442_v13, 0.0  ;;  %v355_v53 = vadd.f32 %v354_v4, %v1132_v8  ;;  %v444_v61 = vadd.f32 %v443_v5, %v1134_v9 }
 0x11a   :  { %v666_v12 = vmax.f32 %v646_v51, %v648_v52  ;;  %v647_v16 = vmax.f32 %v355_v53, 0.0  ;;  %v649_v26 = vmax.f32 %v444_v61, 0.0 }
 0x11b   :  { %v1136_v14 = vpop.f32.mrf.mxu0  ;;  %v1138_v15 = vpop.f32.mrf.mxu1 }
 0x11d   :  { %v1152_v28 = vpop.f32.mrf.mxu0  ;;  %v1154_v29 = vpop.f32.mrf.mxu1 }
 0x11e   :  { %v450_v40 = vadd.f32 %v1154_v29, %v1134_v9 }
 0x120   :  { %v657_v53 = vmax.f32 %v450_v40, 0.0 }
 0x123   :  { %v518_v34 = vpop.f32.mrf.mxu0  ;;  %v607_v35 = vpop.f32.mrf.mxu1 }
 0x124   :  { %v519_v38 = vadd.f32 %v518_v34, %v1144_v22  ;;  %v608_v39 = vadd.f32 %v607_v35, %v1146_v23 }
 0x125   :  { %v520_v44 = vpop.f32.mrf.mxu0  ;;  %v609_v45 = vpop.f32.mrf.mxu1 }
 0x126   :  { %v634_v46 = vmax.f32 %v519_v38, 0.0  ;;  %v636_v47 = vmax.f32 %v608_v39, 0.0  ;;  %v521_v48 = vadd.f32 %v520_v44, %v1156_v30  ;;  %v610_v49 = vadd.f32 %v609_v45, %v1158_v31 }
 0x127   :  { %v524_v54 = vpop.f32.mrf.mxu0  ;;  %v613_v55 = vpop.f32.mrf.mxu1  ;;  %v359_v38 = vadd.f32 %v1136_v14, %v1128_v6  ;;  %v361_v39 = vadd.f32 %v1152_v28, %v1132_v8  ;;  %v448_v44 = vadd.f32 %v1138_v15, %v1130_v7 }
 0x128   :  { %v635_v57 = vmax.f32 %v521_v48, 0.0  ;;  %v637_v58 = vmax.f32 %v610_v49, 0.0  ;;  %v525_v59 = vadd.f32 %v524_v54, %v1144_v22  ;;  %v670_v62 = vmax.f32 %v634_v46, %v636_v47 }
 0x129   :  { %v614_v63 = vadd.f32 %v613_v55, %v1146_v23  ;;  %v526_v0 = vpop.f32.mrf.mxu0  ;;  %v615_v1 = vpop.f32.mrf.mxu1  ;;  %v667_v48 = vmax.f32 %v647_v16, %v649_v26  ;;  %v655_v52 = vmax.f32 %v361_v39, 0.0  ;;  %v654_v15 = vmax.f32 %v359_v38, 0.0 }
 0x12a   :  { %v671_v3 = vmax.f32 %v635_v57, %v637_v58  ;;  %v642_v10 = vmax.f32 %v525_v59, 0.0  ;;  %v527_v4 = vadd.f32 %v526_v0, %v1156_v30  ;;  %v616_v18 = vadd.f32 %v615_v1, %v1158_v31 }
 0x12b   :  { %v644_v17 = vmax.f32 %v614_v63, 0.0  ;;  %v530_v19 = vpop.f32.mrf.mxu0  ;;  %v619_v20 = vpop.f32.mrf.mxu1  ;;  %v678_v27 = vmax.f32 %v662_v50, %v670_v62  ;;  %v669_v59 = vmax.f32 %v655_v52, %v657_v53 }
 0x12c   :  { %v679_v21 = vmax.f32 %v663_v56, %v671_v3  ;;  %v643_v24 = vmax.f32 %v527_v4, 0.0  ;;  %v531_v5 = vadd.f32 %v530_v19, %v1144_v22  ;;  %v620_v25 = vadd.f32 %v619_v20, %v1146_v23 }
 0x12d   :  { %v672_v32 = vmax.f32 %v642_v10, %v644_v17  ;;  %v645_v33 = vmax.f32 %v616_v18, 0.0  ;;  %v532_v11 = vpop.f32.mrf.mxu0  ;;  %v621_v13 = vpop.f32.mrf.mxu1 }
 0x12e   :  { %v650_v34 = vmax.f32 %v531_v5, 0.0  ;;  %v652_v35 = vmax.f32 %v620_v25, 0.0  ;;  %v533_v36 = vadd.f32 %v532_v11, %v1156_v30  ;;  %v622_v37 = vadd.f32 %v621_v13, %v1158_v31  ;;  %848 = vmatprep.mubr.msk.f32.mxu0 %vm711_vm2, %v679_v21 }
 0x12f   :  { %v673_v41 = vmax.f32 %v643_v24, %v645_v33  ;;  %v536_v42 = vpop.f32.mrf.mxu0  ;;  %v625_v43 = vpop.f32.mrf.mxu1  ;;  %789 = vmatmul.mubr.f32.vlgmr.msra.gmra.mxu0 %v678_v27  ;;  %v680_v51 = vmax.f32 %v664_v60, %v672_v32 }
 0x130   :  { %v651_v45 = vmax.f32 %v533_v36, 0.0  ;;  %v653_v46 = vmax.f32 %v622_v37, 0.0  ;;  %v537_v47 = vadd.f32 %v536_v42, %v1144_v22  ;;  %v674_v6 = vmax.f32 %v650_v34, %v652_v35 }
 0x131   :  { %v681_v49 = vmax.f32 %v665_v2, %v673_v41  ;;  %v626_v14 = vadd.f32 %v625_v43, %v1146_v23  ;;  %v538_v8 = vpop.f32.mrf.mxu0  ;;  %v627_v28 = vpop.f32.mrf.mxu1  ;;  %v656_v22 = vmax.f32 %v448_v44, 0.0 }
 0x132   :  { %v675_v50 = vmax.f32 %v651_v45, %v653_v46  ;;  %v658_v9 = vmax.f32 %v537_v47, 0.0  ;;  %v539_v29 = vadd.f32 %v538_v8, %v1156_v30  ;;  %v628_v7 = vadd.f32 %v627_v28, %v1158_v31  ;;  %v847_v31 = vld [vmem:[%s1215_s4] ss:$0 sm:$0xff] }
 0x133   :  { %v660_v54 = vmax.f32 %v626_v14, 0.0  ;;  %849 = vmatprep.mubr.msk.f32.mxu0 %vm711_vm2, %v681_v49  ;;  %v682_v23 = vmax.f32 %v666_v12, %v674_v6  ;;  %v668_v60 = vmax.f32 %v654_v15, %v656_v22 }
 0x134   :  { %v683_v55 = vmax.f32 %v667_v48, %v675_v50  ;;  %v659_v56 = vmax.f32 %v539_v29, 0.0  ;;  %794 = vmatmul.mubr.f32.gmra.mxu0 %v680_v51  ;;  %v661_v57 = vmax.f32 %v628_v7, 0.0 }
 0x135   :  { %v676_v58 = vmax.f32 %v658_v9, %v660_v54 }
 0x136   :  { %850 = vmatprep.mubr.msk.f32.mxu1 %vm711_vm2, %v683_v55  ;;  %v677_v30 = vmax.f32 %v659_v56, %v661_v57 }
 0x137   :  { %799 = vmatmul.mubr.f32.vlgmr.msra.gmra.mxu1 %v682_v23  ;;  %v684_v62 = vmax.f32 %v668_v60, %v676_v58 }
 0x138   :  { %v685_v61 = vmax.f32 %v669_v59, %v677_v30 }
 0x13a   :  { %851 = vmatprep.mubr.msk.f32.mxu1 %vm711_vm2, %v685_v61 }
 0x13b   :  { %804 = vmatmul.mubr.f32.gmra.mxu1 %v684_v62 }
 0x1ef   :  { %v790_v63 = vpop.f32.mrf.mxu0 }
 0x1f0   :  { %v791_v0 = vadd.f32 %v847_v31, %v790_v63 }
 0x1f1   :  { %v792_v1 = vpop.f32.mrf.mxu0 }
 0x1f2   :  { %v809_v2 = vmax.f32 %v791_v0, 0.0 }
 0x1f4   :  { %814 = vst.msk [vmem:[%s1216_s5] sm:$0xff] %vm813_vm3, %v809_v2  ;;  %v795_v3 = vpop.f32.mrf.mxu0 }
 0x1f5   :  { %v796_v10 = vadd.f32 %v847_v31, %v795_v3 }
 0x1f6   :  { %v797_v4 = vpop.f32.mrf.mxu0 }
 0x1f7   :  { %v810_v12 = vmax.f32 %v796_v10, 0.0  ;;  %v800_v16 = vpop.f32.mrf.mxu1 }
 0x1f8   :  { %v801_v17 = vadd.f32 %v847_v31, %v800_v16 }
 0x1f9   :  { %815 = vst.msk [vmem:[%s1216_s5 + $0x8] sm:$0xff] %vm813_vm3, %v810_v12  ;;  %v802_v18 = vpop.f32.mrf.mxu1 }
 0x1fa   :  { %v811_v19 = vmax.f32 %v801_v17, 0.0 }
 0x1fb   :  { %v805_v20 = vpop.f32.mrf.mxu1 }
 0x1fc   :  { %816 = vst.msk [vmem:[%s1216_s5 + $0x10] sm:$0xff] %vm813_vm3, %v811_v19  ;;  %v806_v21 = vadd.f32 %v847_v31, %v805_v20 }
 0x1fd   :  { %v807_v24 = vpop.f32.mrf.mxu1 }
 0x1fe   :  { %v812_v5 = vmax.f32 %v806_v21, 0.0 }
 0x200   :  { %817 = vst.msk [vmem:[%s1216_s5 + $0x18] sm:$0xff] %vm813_vm3, %v812_v5 }
 0x201   :  { %822 = vsyncpa [#allocation3], 1 }

// kernel: _forward_batch_impl.5
= control target key start
LH: loop header
LB: loop body
LE: loop exit
PB: predicated region body
PF: predicated region fallthrough
CT: control target
= control target key end

     0   :  { %s1281_s13 = smov 0   ;;  %s1283_s14 = smov 0   ;;  %s1485_s0 = inlined_call_operand.vmem [shape: f32[2,16,72], index: 0, kind: input, shape index: {}]   ;;  %s1486_s1 = inlined_call_operand.vmem [shape: f32[32,128], index: 1, kind: input, shape index: {}]   ;;  %s1487_s2 = inlined_call_operand.vmem [shape: f32[32,128], index: 2, kind: input, shape index: {}]   ;;  %s1488_s3 = inlined_call_operand.vmem [shape: f32[1,128], index: 3, kind: input, shape index: {}]   ;;  %s1489_s4 = inlined_call_operand.vmem [shape: f32[1,128], index: 4, kind: input, shape index: {}]   ;;  %s1490_s5 = inlined_call_operand.vmem [shape: f32[32,64], index: 5, kind: input, shape index: {}]   ;;  %s1491_s6 = inlined_call_operand.vmem [shape: f32[32,64], index: 6, kind: input, shape index: {}]   ;;  %s1492_s7 = inlined_call_operand.vmem [shape: f32[1,64], index: 7, kind: input, shape index: {}]   ;;  %s1493_s8 = inlined_call_operand.vmem [shape: f32[64,128], index: 8, kind: input, shape index: {}]   ;;  %s1494_s9 = inlined_call_operand.vmem [shape: f32[1,128], index: 9, kind: input, shape index: {}]   ;;  %s1495_s10 = inlined_call_operand.vmem [shape: f32[16,128], index: 10, kind: output, shape index: {}]  }
   0x1   :  { %s1285_s15 = smov 0   ;;  %s1287_s16 = smov 0  }
   0x2   :  { %s1289_s17 = smov 0  }
   0x3 LB: > { %s29_s18 = sadd.s32 1, %s1209_s15  ;;  %s32_s19 = sadd.s32 1, %s1213_s16  ;;  %s1217_s17 = sphi %s1289_s17, %s20_s17   ;;  %s1213_s16 = sphi %s1287_s16, %s1499_s16   ;;  %s1209_s15 = sphi %s1285_s15, %s1498_s15   ;;  %s1205_s14 = sphi %s1283_s14, %s1497_s14   ;;  %s1201_s13 = sphi %s1281_s13, %s1496_s13  }
   0x4   : > { %p30_p0 = scmp.ge.s32.totalorder %s29_s18, 2  ;;  %p1004_p1 = scmp.ge.s32.totalorder %s1217_s17, 1 }
   0x5   : > { %p329_p2 = scmp.lt.s32.totalorder %s1217_s17, 5 }
   0x6   : > { %s1501_s18 = smov (%p30_p0, %s29_s18), 0  ;;  %s1503_s19 = smov (!%p30_p0, %s32_s19), %s1213_s16 }
   0x7   : > { %p330_p3 = pnand %p1004_p1, %p329_p2  ;;  %p34_p4 = scmp.ge.s32.totalorder %s1503_s19, 2 }
   0x8   : > { %p369_p5 = scmp.lt.s32.totalorder (!%p330_p3), %s1201_s13, 1  ;;  %p371_p6 = scmp.lt.s32.totalorder (!%p330_p3), %s1205_s14, 1 }
   0x9   : > { %s1505_s19 = smov (%p34_p4, %s1503_s19), 0  ;;  %333 = sbr.rel (%p330_p3) target bundleno = 1956 (0x7a4), region = 60 }
   0xa   : > { %p1008_p7 = scmp.ne.s32.totalorder (!%p330_p3), %s1201_s13, 0 }
   0xe   : > { %s370_s20 = scalar_select %p369_p5, %s1201_s13, 1 }
   0xf   : > { %s1507_s14 = smov (!%p371_p6, %s1205_s14), 1  ;;  %384 = sbr.rel (%p1008_p7) target bundleno = 23 (0x17), region = 64 }
  0x10   : > { %s1005_s21 = sshll.u32 %s370_s20, 1  ;;  %s1007_s23 = sshll.u32 %s1507_s14, 3 }
  0x11   : > { %s374_s22 = sadd.s32 %s1005_s21, %s1507_s14  ;;  %s1314_s27 = scalar_lea.vmem %s1495_s10, %s1007_s23 }
  0x12   : > { %s1006_s24 = sshll.u32 %s374_s22, 3 }
  0x13   : > { %s376_s30 = scalar_lea.vmem %s1485_s0, %s1006_s24 }
  0x14   : > { %vm385_vm0 = vcmask 261120   ;;  %v1219_v0 = vmov 0.0  }
  0x15   : > { %386 = vst.msk [vmem:[#allocation2] sm:$0xff] %vm385_vm0, %v1219_v0  ;;  %387 = vst.msk [vmem:[#allocation3] sm:$0xff] %vm385_vm0, %v1219_v0 }
  0x16   : > { %388 = vst [vmem:[%s1314_s27] sm:$0xff] %v1219_v0 }
  0x17 PF: > { %v1320_v1 = vld [vmem:[%s376_s30] sm:$0xff]  ;;  %v402_v2 = vld [vmem:[%s1486_s1 + $0x18] sm:$0xff]  ;;  %v1220_v3 = vmov 71   ;;  %v1221_v4 = vmov 0.0   ;;  %v401_v5 = vld [vmem:[%s1486_s1 + $0x10] sm:$0xff]  ;;  %vm1222_vm1 = vmmov 0  }
  0x18   : > { %1162 = vset.pattern.permute.xlu0 %v1220_v3  ;;  %1052 = vmatprep.subr.mxu1 %v1221_v4  ;;  %v400_v6 = vld [vmem:[%s1486_s1 + $0x8] sm:$0xff]  ;;  %v399_v7 = vld [vmem:[%s1486_s1] sm:$0xff]  ;;  %vm410_vm2 = vcmask 261120   ;;  %v486_v8 = vld [vmem:[%s1487_s2 + $0x18] sm:$0xff]  ;;  %s1223_s13 = smov 32   ;;  %s1224_s26 = smov 96  }
  0x19   : > { %393 = vperm.xlu0 %1162, %v1320_v1   ;;  %1053 = vmatpush3.msra.mxu1 %v402_v2  ;;  %v485_v9 = vld [vmem:[%s1487_s2 + $0x10] sm:$0xff]  ;;  %v484_v10 = vld [vmem:[%s1487_s2 + $0x8] sm:$0xff]  ;;  %v483_v11 = vld [vmem:[%s1487_s2] sm:$0xff]  ;;  %s1225_s28 = smov 64   ;;  %vm785_vm3 = vcmask 523264   ;;  %vm884_vm5 = vcmask 56320  }
  0x1a   : > { %1054 = vmatprep.subr.mxu1 %v1221_v4  ;;  %1060 = vmatprep.mubr.msk.f32.mxu1 %vm1222_vm1, %v1221_v4  ;;  %v1009_v19 = vld [vmem:[%s1488_s3] ss:$0 sm:$0xff]  ;;  %v614_v37 = vld [vmem:[%s1491_s6 + $0x18] sm:$0xff]  ;;  %v613_v38 = vld [vmem:[%s1491_s6 + $0x10] sm:$0xff] }
  0x1b   : > { %1055 = vmatpush3.msra.mxu1 %v401_v5  ;;  %1074 = vmatprep.subr.mxu0 %v1221_v4  ;;  %v1012_v22 = vld [vmem:[%s1489_s4] ss:$0 sm:$0xff]  ;;  %v610_v39 = vld [vmem:[%s1490_s5 + $0x18] sm:$0xff]  ;;  %v609_v40 = vld [vmem:[%s1490_s5 + $0x10] sm:$0xff] }
  0x1c   : > { %1056 = vmatprep.subr.mxu1 %v1221_v4  ;;  %1082 = vmatprep.mubr.msk.f32.mxu0 %vm1222_vm1, %v1221_v4  ;;  %v390_v12 = vld [vmem:[#allocation2] sm:$0xff]  ;;  %v397_v13 = vld [vmem:[#allocation3] sm:$0xff]  ;;  %v777_v50 = vld [vmem:[%s1493_s8 + $0x38] sm:$0xff] }
  0x1d   : > { %1057 = vmatpush3.msra.mxu1 %v400_v6  ;;  %1075 = vmatpush3.msra.mxu0 %v614_v37  ;;  %v612_v41 = vld [vmem:[%s1491_s6 + $0x8] sm:$0xff]  ;;  %v611_v43 = vld [vmem:[%s1491_s6] sm:$0xff]  ;;  %v776_v51 = vld [vmem:[%s1493_s8 + $0x30] sm:$0xff] }
  0x1e   : > { %1058 = vmatprep.subr.mxu1 %v1221_v4  ;;  %1076 = vmatprep.subr.mxu0 %v1221_v4  ;;  %v608_v42 = vld [vmem:[%s1490_s5 + $0x8] sm:$0xff]  ;;  %v607_v44 = vld [vmem:[%s1490_s5] sm:$0xff]  ;;  %v773_v54 = vld [vmem:[%s1493_s8 + $0x18] sm:$0xff] }
  0x1f   : > { %1059 = vmatpush3.msra.mxu1 %v399_v7  ;;  %1077 = vmatpush3.msra.mxu0 %v613_v38  ;;  %v775_v52 = vld [vmem:[%s1493_s8 + $0x28] sm:$0xff]  ;;  %v774_v53 = vld [vmem:[%s1493_s8 + $0x20] sm:$0xff]  ;;  %v772_v55 = vld [vmem:[%s1493_s8 + $0x10] sm:$0xff] }
  0x20   : > { %1061 = vmatmul.mubr.msk.f32.vlgmr.msra.gmra.mxu1 %vm410_vm2, %v1320_v1  ;;  %1063 = vmatprep.subr.mxu1 %v1221_v4  ;;  %v771_v56 = vld [vmem:[%s1493_s8 + $0x8] sm:$0xff]  ;;  %v770_v58 = vld [vmem:[%s1493_s8] sm:$0xff] }
  0x21   : > { %1064 = vmatpush3.msra.mxu1 %v486_v8  ;;  %1071 = vmatprep.mubr.msk.f32.mxu1 %vm1222_vm1, %v1221_v4  ;;  %v1016_v61 = vld [vmem:[%s1492_s7] ss:$0 sm:$0xff] }
  0x22   : > { %1065 = vmatprep.subr.mxu1 %v1221_v4  ;;  %1078 = vmatprep.subr.mxu0 %v1221_v4  ;;  %v1017_v3 = vld [vmem:[%s1494_s9] ss:$0 sm:$0xff] }
  0x23   : > { %1066 = vmatpush3.msra.mxu1 %v485_v9  ;;  %1079 = vmatpush3.msra.mxu0 %v612_v41 }
  0x24   : > { %1067 = vmatprep.subr.mxu1 %v1221_v4  ;;  %1080 = vmatprep.subr.mxu0 %v1221_v4 }
  0x25   : > { %1068 = vmatpush3.msra.mxu1 %v484_v10  ;;  %1081 = vmatpush3.msra.mxu0 %v611_v43 }
  0x26   : > { %1069 = vmatprep.subr.mxu1 %v1221_v4  ;;  %1096 = vmatprep.subr.mxu0 %v1221_v4 }
  0x27   : > { %1070 = vmatpush3.msra.mxu1 %v483_v11 }
  0x28   : > { %1085 = vmatprep.subr.mxu1 %v1221_v4 }
  0x94   : > { %v394_v14 = vpop.permute.xlu0 %393 }
  0x95   : > { %v396_v15 = vmul.f32 %v394_v14, %v390_v12  ;;  %v398_v16 = vmul.f32 %v397_v13, %v394_v14 }
  0x97   : > { %577 = vrot.lane.b32.xlu1 %v398_v16, %s1223_s13  ;;  %1072 = vmatmul.mubr.msk.f32.vlgmr.msra.gmra.mxu1 %vm410_vm2, %v396_v15 }
  0x98   : > { %1093 = vmatprep.mubr.msk.f32.mxu1 %vm1222_vm1, %v1221_v4  ;;  %1086 = vmatpush3.msra.mxu1 %v610_v39 }
  0x99   : > { %1087 = vmatprep.subr.mxu1 %v1221_v4 }
  0x9a   : > { %1088 = vmatpush3.msra.mxu1 %v609_v40 }
  0x9b   : > { %1089 = vmatprep.subr.mxu1 %v1221_v4 }
  0x9c   : > { %1090 = vmatpush3.msra.mxu1 %v608_v42 }
  0x9d   : > { %1091 = vmatprep.subr.mxu1 %v1221_v4 }
  0x9e   : > { %1092 = vmatpush3.msra.mxu1 %v607_v44 }
  0xe0   : > { %v479_v17 = vpop.f32.mrf.mxu1 }
  0xe1   : > { %v480_v20 = vadd.f32 %v1009_v19, %v479_v17 }
  0xe2   : > { %v1062_v18 = vpop.f32.mrf.mxu1 }
 0x109   : > { %v578_v33 = vpop.permute.xlu1 %577 }
 0x157   : > { %v556_v21 = vpop.f32.mrf.mxu1 }
 0x158   : > { %v560_v23 = vadd.f32 %v556_v21, %v480_v20 }
 0x159   : > { %v1073_v24 = vpop.f32.mrf.mxu1 }
 0x15a   : > { %v568_v25 = vadd.f32 %v1012_v22, %v560_v23 }
 0x15c   : > { %1163 = vtanh.f32 %v568_v25  ;;  %v1013_v27 = vmul.f32 -1.442695, %v568_v25 }
 0x15e   : > { %1165 = vpow2.f32 %v1013_v27 }
 0x169   : > { %v1164_v26 = vpop.eup %1163 }
 0x16a   : > { %582 = vrot.lane.b32.xlu0 %v1164_v26, %s1223_s13 }
 0x16b   : > { %v1166_v28 = vpop.eup %1165 }
 0x16c   : > { %v572_v29 = vadd.f32 1.0, %v1166_v28 }
 0x16e   : > { %1167 = vrcp.f32 %v572_v29 }
 0x17b   : > { %v1168_v30 = vpop.eup %1167 }
 0x17c   : > { %v580_v34 = vmul.f32 %v1168_v30, %v578_v33 }
 0x1dc   : > { %v583_v31 = vpop.permute.xlu0 %582 }
 0x1dd   : > { %v585_v32 = vmul.f32 %v1168_v30, %v583_v31 }
 0x1df   : > { %587 = vrot.lane.b32.xlu1 %v585_v32, %s1223_s13 }
 0x251   : > { %v588_v35 = vpop.permute.xlu1 %587 }
 0x252   : > { %v1377_v36 = vadd.f32 %v588_v35, %v580_v34 }
 0x254   : > { %1169 = vtanh.f32 %v1377_v36 }
 0x261   : > { %v1170_v45 = vpop.eup %1169 }
 0x262   : > { %593 = vrot.lane.b32.xlu0 %v1170_v45, %s1223_s13 }
 0x266   : > { %615 = vrot.lane.b32.xlu0 %v1320_v1, %s1224_s26 }
 0x2d4   : > { %v594_v46 = vpop.permute.xlu0 %593 }
 0x2d5   : > { %v596_v47 = vmul.f32 %v1168_v30, %v594_v46 }
 0x2d7   : > { %598 = vrot.lane.b32.xlu1 %v596_v47, %s1225_s28  ;;  %v925_v47 = vld [vmem:[%s1314_s27] sm:$0xff] }
 0x2d8   : > { %v616_v48 = vpop.permute.xlu0 %615 }
 0x2d9   : > { %1083 = vmatmul.mubr.msk.f32.vlgmr.msra.gmra.mxu0 %vm410_vm2, %v616_v48 }
 0x2da   : > { %1112 = vmatprep.mubr.msk.f32.mxu0 %vm1222_vm1, %v1221_v4  ;;  %1097 = vmatpush3.msra.mxu0 %v777_v50 }
 0x2db   : > { %1098 = vmatprep.subr.mxu0 %v1221_v4 }
 0x2dc   : > { %1099 = vmatpush3.msra.mxu0 %v776_v51 }
 0x2dd   : > { %1100 = vmatprep.subr.mxu0 %v1221_v4 }
 0x2de   : > { %1101 = vmatpush3.msra.mxu0 %v775_v52 }
 0x2df   : > { %1102 = vmatprep.subr.mxu0 %v1221_v4 }
 0x2e0   : > { %1103 = vmatpush3.msra.mxu0 %v774_v53 }
 0x2e1   : > { %1104 = vmatprep.subr.mxu0 %v1221_v4 }
 0x2e2   : > { %1105 = vmatpush3.msra.mxu0 %v773_v54 }
 0x2e3   : > { %1106 = vmatprep.subr.mxu0 %v1221_v4 }
 0x2e4   : > { %1107 = vmatpush3.msra.mxu0 %v772_v55 }
 0x2e5   : > { %1108 = vmatprep.subr.mxu0 %v1221_v4 }
 0x2e6   : > { %1109 = vmatpush3.msra.mxu0 %v771_v56 }
 0x2e7   : > { %1110 = vmatprep.subr.mxu0 %v1221_v4 }
 0x2e8   : > { %1111 = vmatpush3.msra.mxu0 %v770_v58 }
 0x349   : > { %v599_v49 = vpop.permute.xlu1 %598 }
 0x34a   : > { %601 = vst.msk [vmem:[#allocation2] sm:$0xff] %vm410_vm2, %v599_v49  ;;  %1094 = vmatmul.mubr.msk.f32.vlgmr.msra.gmra.mxu1 %vm410_vm2, %v599_v49 }
 0x399   : > { %v685_v57 = vpop.f32.mrf.mxu0 }
 0x39b   : > { %v1084_v59 = vpop.f32.mrf.mxu0 }
 0x40a   : > { %v757_v60 = vpop.f32.mrf.mxu1 }
 0x40b   : > { %v758_v62 = vadd.f32 %v757_v60, %v685_v57 }
 0x40c   : > { %v1095_v63 = vpop.f32.mrf.mxu1 }
 0x40d   : > { %v768_v0 = vadd.f32 %v1016_v61, %v758_v62 }
 0x40f   : > { %1171 = vtanh.f32 %v768_v0 }
 0x41c   : > { %v1172_v2 = vpop.eup %1171 }
 0x41d   : > { %1113 = vmatmul.mubr.msk.f32.vlgmr.msra.gmra.mxu0 %vm785_vm3, %v1172_v2 }
 0x4dd   : > { %v855_v5 = vpop.f32.mrf.mxu0 }
 0x4de   : > { %v856_v6 = vadd.f32 %v1017_v3, %v855_v5 }
 0x4df   : > { %v1114_v7 = vpop.f32.mrf.mxu0 }
 0x4e0   : > { %859 = vmax.xlane.f32.xlu1 %v856_v6 }
 0x569   : > { %v860_v8 = vpop.xlane.xlu1 %859 }
 0x56a   : > { %v861_v9 = vsub.f32 %v856_v6, %v860_v8  ;;  %vm889_vm4 = vcmp.ge.f32.partialorder %v856_v6, %v860_v8 }
 0x56b   : > { %v1019_v10 = vsel %vm889_vm4, 1.0, %v1221_v4 }
 0x56c   : > { %v862_v11 = vmul.f32 1.442695, %v861_v9  ;;  %893 = vrot.lane.b32.xlu1 %v1019_v10, %s1225_s28 }
 0x56e   : > { %1173 = vpow2.f32 %v862_v11 }
 0x57b   : > { %v1174_v12 = vpop.eup %1173 }
 0x57c   : > { %864 = vadd.xlane.f32.xlu0 %v1174_v12 }
 0x5de   : > { %v894_v17 = vpop.permute.xlu1 %893 }
 0x5df   : > { %v896_v18 = vmul.f32 %v894_v17, %v1320_v1 }
 0x605   : > { %v865_v13 = vpop.xlane.xlu0 %864 }
 0x606   : > { %1175 = vlog2.f32 %v865_v13 }
 0x607   : > { %1177 = vrcp.f32 %v865_v13 }
 0x613   : > { %v1176_v14 = vpop.eup %1175 }
 0x614   : > { %v867_v15 = vmul.f32 0.6931472, %v1176_v14  ;;  %v1178_v21 = vpop.eup %1177 }
 0x615   : > { %v870_v22 = vmul.f32 %v1178_v21, %v1174_v12 }
 0x616   : > { %v868_v16 = vsub.f32 %v861_v9, %v867_v15 }
 0x618   : > { %876 = vrot.lane.b32.xlu0 %v868_v16, %s1225_s28  ;;  %v871_v23 = vmul.f32 %v870_v22, %v868_v16 }
 0x61c   : > { %898 = vrot.lane.b32.xlu0 %v896_v18, %s1225_s28 }
 0x68a   : > { %v877_v19 = vpop.permute.xlu0 %876 }
 0x68b   : > { %v879_v20 = vmul.f32 %v877_v19, %v1320_v1  ;;  %v907_v1 = vlaneseq }
 0x68d   : > { %881 = vrot.lane.b32.xlu1 %v879_v20, %s1225_s28  ;;  %v908_v30 = vand.u32 127, %v907_v1  ;;  %v924_v44 = vshrl.u32 %v907_v1, 7 }
 0x68e   : > { %v899_v26 = vpop.permute.xlu0 %898 }
 0x68f   : > { %v901_v27 = vsel %vm884_vm5, %v899_v26, 0.0  ;;  %vm911_vm6 = vcmp.eq.s32.totalorder %v908_v30, 1  ;;  %vm909_vm7 = vcmp.eq.s32.totalorder %v908_v30, 0  ;;  %vm914_vm8 = vcmp.eq.s32.totalorder %v908_v30, 2 }
 0x690   : > { %vm926_vm10 = vcmp.eq.s32.totalorder %v924_v44, 0 }
 0x6b1   : > { %872 = vadd.xlane.f32.xlu1 %v871_v23 }
 0x6c2   : > { %603 = vrot.lane.b32.xlu1 %v1377_v36, %s1224_s26 }
 0x6ff   : > { %v882_v24 = vpop.permute.xlu1 %881 }
 0x700   : > { %v885_v25 = vsel %vm884_vm5, %v882_v24, 0.0 }
 0x701   : > { %886 = vadd.xlane.f32.xlu0 %v885_v25 }
 0x705   : > { %902 = vadd.xlane.f32.xlu0 %v901_v27 }
 0x73a   : > { %v873_v28 = vpop.xlane.xlu1 %872 }
 0x73b   : > { %v874_v32 = vsub.f32 0.0, %v873_v28 }
 0x73d   : > { %v910_v36 = vsel %vm909_vm7, %v874_v32, 0.0 }
 0x73e   : > { %v604_v29 = vpop.permute.xlu1 %603 }
 0x73f   : > { %606 = vst.msk [vmem:[#allocation3] sm:$0xff] %vm410_vm2, %v604_v29 }
 0x78a   : > { %v887_v31 = vpop.xlane.xlu0 %886 }
 0x78b   : > { %v888_v33 = vsub.f32 0.0, %v887_v31 }
 0x78d   : > { %v912_v34 = vsel %vm911_vm6, %v888_v33, 0.0 }
 0x78e   : > { %v903_v35 = vpop.xlane.xlu0 %902  ;;  %v913_v37 = vadd.f32 %v912_v34, %v910_v36 }
 0x78f   : > { %vm904_vm9 = vcmp.gt.f32.partialorder %v903_v35, 0.0 }
 0x790   : > { %v1020_v38 = vsel %vm904_vm9, 1.0, %v1221_v4 }
 0x791   : > { %v915_v39 = vsel %vm914_vm8, %v1020_v38, 0.0 }
 0x792   : > { %v916_v40 = vadd.f32 %v915_v39, %v913_v37 }
 0x794   : > { %v917_v41 = vrot.slane %v916_v40, 4 }
 0x796   : > { %v918_v42 = vadd.f32 %v917_v41, %v916_v40 }
 0x798   : > { %v919_v43 = vrot.slane %v918_v42, 2 }
 0x79a   : > { %v920_v45 = vadd.f32 %v919_v43, %v918_v42 }
 0x79c   : > { %v921_v46 = vrot.slane %v920_v45, 1 }
 0x79e   : > { %v922_v48 = vadd.f32 %v921_v46, %v920_v45 }
 0x7a0   : > { %v927_v49 = vsel %vm926_vm10, %v922_v48, 0.0 }
 0x7a1   : > { %v928_v50 = vadd.f32 %v927_v49, %v925_v47 }
 0x7a3   : > { %929 = vst [vmem:[%s1314_s27] sm:$0xff] %v928_v50 }
 0x7a4 PF: > { %s20_s17 = sadd.s32 1, %s1217_s17   ;;  %s1496_s13 = smov %s1209_s15 }
 0x7a5   : > { %p17_p8 = scmp.ge.s32.totalorder %s20_s17, 6   ;;  %s1497_s14 = smov %s1213_s16 }
 0x7a6   : > { %s1498_s15 = smov %s1501_s18  ;;  %s1499_s16 = smov %s1505_s19 }
 0x7a7   :  { %19 = sbr.rel (!%p17_p8) target bundleno = 3 (0x3), region = 94 }

</bundles_post_ra>
